<compile_context>
chip_gen: v7x
topology: tpu7x:2x2x1
jax: 0.10.0
libtpu: 0.0.40
codegen_flags: <defaults>
</compile_context>

<pallas_src>
import functools

import jax
import jax.numpy as jnp
from jax.experimental import pallas as pl
from jax.experimental.pallas import tpu as pltpu

_NUM_CLASSES = 10   # fc1 = Linear(1024, 10)
_K_PAD = 16         # pad 10 -> 16 output columns (sublane multiple, tiny store)


def _head_kernel(x_ref, w_ref, b_ref, o_ref):
    """Fused global-avg-pool + fc1 (single block).

    x_ref : (N, C, HW)    f32   backbone feature map, free view of NCHW
    w_ref : (_K_PAD, C)   bf16  fc1 weight (torch layout), 1/(H*W) folded in
    b_ref : (1, _K_PAD)   f32   fc1 bias, K-padded
    o_ref : (N, _K_PAD)   f32   padded logits
    """
    # AdaptiveAvgPool2d((1,1)) == spatial mean; the 1/(H*W) scale lives in the
    # weight, so the kernel only sums.  Feature data stays f32 end-to-end.
    pooled = jnp.sum(x_ref[...], axis=2)                      # (N, C) f32
    # Dropout(0.2) is identity at inference.  fc1 on the MXU: both operands
    # bf16 (single pass on every generation incl. v5e), f32 accumulation.
    logits = jax.lax.dot_general(
        pooled.astype(jnp.bfloat16), w_ref[...],
        dimension_numbers=(((1,), (1,)), ((), ())),           # contract C
        preferred_element_type=jnp.float32)                   # (N, _K_PAD)
    o_ref[...] = logits + b_ref[...]


def prepare_head_params(fc1_w, fc1_b, spatial_hw):
    """One-time (model-load) prep of fc1 params for the kernel.

    Folds the average-pool 1/(H*W) scale into the weight (in f32, BEFORE the
    bf16 cast), zero-pads the 10 output rows to 16, and keeps torch (K, C)
    layout so the 1024-channel axis is lane-dense."""
    k, c = fc1_w.shape
    w = jnp.zeros((_K_PAD, c), jnp.float32).at[:k, :].set(
        fc1_w.astype(jnp.float32) / float(spatial_hw))
    b = jnp.zeros((1, _K_PAD), jnp.float32).at[0, :k].set(
        fc1_b.astype(jnp.float32))
    return w.astype(jnp.bfloat16), b


@functools.partial(jax.jit, static_argnames=("num_classes",))
def net_google_head(feat_nchw, w_prepped, b_prepped, num_classes=_NUM_CLASSES):
    """feat_nchw: (N, 1024, H, W) backbone output (float32, NCHW).
    w_prepped / b_prepped: outputs of prepare_head_params (constants per model)."""
    n, c, h, w = feat_nchw.shape
    hw = h * w
    x = feat_nchw.reshape(n, c, hw)   # free view — no transpose, no cast pass

    out = pl.pallas_call(
        _head_kernel,
        out_shape=jax.ShapeDtypeStruct((n, _K_PAD), jnp.float32),
        grid_spec=pltpu.PrefetchScalarGridSpec(
            num_scalar_prefetch=0,
            grid=(1,),
            in_specs=[
                pl.BlockSpec((n, c, hw), lambda i: (0, 0, 0)),
                pl.BlockSpec((_K_PAD, c), lambda i: (0, 0)),
                pl.BlockSpec((1, _K_PAD), lambda i: (0, 0)),
            ],
            out_specs=pl.BlockSpec((n, _K_PAD), lambda i: (0, 0)),
        ),
        compiler_params=pltpu.CompilerParams(
            dimension_semantics=("arbitrary",)),
    )(x, w_prepped, b_prepped)

    return out[:, :num_classes]


def reference_head(feat_nchw, fc1_w, fc1_b):
    pooled = jnp.mean(feat_nchw, axis=(2, 3))           # (N, 1024)
    return pooled @ fc1_w.T + fc1_b                     # (N, 10)


if __name__ == "__main__":
    key = jax.random.PRNGKey(0)
    k_feat, k_w, k_b = jax.random.split(key, 3)

    # Module-consistent shapes: googlenet features have 1024 channels
    # (required by fc1 = Linear(1024, 10)); small batch and spatial extent.
    N, C, H, W = 2, 1024, 4, 4
    feat = jax.random.normal(k_feat, (N, C, H, W), dtype=jnp.float32)

    # Deterministic fc1 params (torch Linear layout: weight (10,1024), bias (10,)).
    bound = 1.0 / (C ** 0.5)
    fc1_w = jax.random.uniform(k_w, (_NUM_CLASSES, C), jnp.float32, -bound, bound)
    fc1_b = jax.random.uniform(k_b, (_NUM_CLASSES,), jnp.float32, -bound, bound)

    # One-time param prep, hoisted out of the per-inference path.
    w_prep, b_prep = jax.block_until_ready(
        prepare_head_params(fc1_w, fc1_b, H * W))

    out = jax.block_until_ready(net_google_head(feat, w_prep, b_prep))

    ref = reference_head(feat, fc1_w, fc1_b)
    assert out.shape == (N, _NUM_CLASSES)
    # bf16 weight + bf16 pooled MXU operands -> bf16-appropriate tolerance.
    assert jnp.allclose(out, ref, atol=1e-2, rtol=1e-2), "mismatch vs reference"

    print("KERNEL_OK")
</pallas_src>

<mosaic_0001>
module attributes {stable_mosaic.version = 11 : i64} {
  func.func @_head_kernel(%arg0: i32, %arg1: memref<2x1024x16xf32, #tpu.memory_space<vmem>>, %arg2: memref<16x1024xbf16, #tpu.memory_space<vmem>>, %arg3: memref<1x16xf32, #tpu.memory_space<vmem>>, %arg4: memref<2x16xf32, #tpu.memory_space<vmem>>) attributes {dimension_semantics = [#tpu.dimension_semantics<arbitrary>], iteration_bounds = array<i64: 1>, scalar_prefetch = 0 : i64, scratch_operands = 0 : i64, tpu.core_type = #tpu.core_type<tc>, window_params = [{pipeline_mode = #tpu.pipeline_mode<synchronous>, transform_indices = @transform_0, window_bounds = array<i64: 2, 1024, 16>}, {pipeline_mode = #tpu.pipeline_mode<synchronous>, transform_indices = @transform_1, window_bounds = array<i64: 16, 1024>}, {pipeline_mode = #tpu.pipeline_mode<synchronous>, transform_indices = @transform_2, window_bounds = array<i64: 1, 16>}, {pipeline_mode = #tpu.pipeline_mode<synchronous>, transform_indices = @transform_3, window_bounds = array<i64: 2, 16>}]} {
    %c0 = arith.constant 0 : index
    %c0_0 = arith.constant 0 : index
    %c0_1 = arith.constant 0 : index
    %0 = vector.load %arg1[%c0, %c0_0, %c0_1] : memref<2x1024x16xf32, #tpu.memory_space<vmem>>, vector<2x1024x16xf32>
    %cst = arith.constant dense<0.000000e+00> : vector<2x1024xf32>
    %1 = vector.multi_reduction <add>, %0, %cst [2] : vector<2x1024x16xf32> to vector<2x1024xf32>
    %2 = arith.truncf %1 : vector<2x1024xf32> to vector<2x1024xbf16>
    %c0_2 = arith.constant 0 : index
    %c0_3 = arith.constant 0 : index
    %3 = vector.load %arg2[%c0_2, %c0_3] : memref<16x1024xbf16, #tpu.memory_space<vmem>>, vector<16x1024xbf16>
    %cst_4 = arith.constant dense<0.000000e+00> : vector<2x16xf32>
    %4 = tpu.matmul %2, %3, %cst_4 {dimension_numbers = #tpu.dot_dimension_numbers<[1], [1], [0], [0], [0, 0, 1, 0], [], []>} : vector<2x1024xbf16>, vector<16x1024xbf16>, vector<2x16xf32> -> vector<2x16xf32>
    %c0_5 = arith.constant 0 : index
    %c0_6 = arith.constant 0 : index
    %5 = vector.load %arg3[%c0_5, %c0_6] : memref<1x16xf32, #tpu.memory_space<vmem>>, vector<1x16xf32>
    %6 = vector.broadcast %5 : vector<1x16xf32> to vector<2x16xf32>
    %7 = arith.addf %4, %6 : vector<2x16xf32>
    %c0_7 = arith.constant 0 : index
    %c0_8 = arith.constant 0 : index
    %8 = vector.load %arg4[%c0_7, %c0_8] : memref<2x16xf32, #tpu.memory_space<vmem>>, vector<2x16xf32>
    tpu.vector_store %arg4[%c0_7, %c0_8], %7 {strides = array<i32>} : memref<2x16xf32, #tpu.memory_space<vmem>>, vector<2x16xf32>,
    return
  }
  func.func @transform_0(%arg0: i32) -> (i32, i32, i32) {
    %c0_i32 = arith.constant 0 : i32
    %c0_i32_0 = arith.constant 0 : i32
    %c0_i32_1 = arith.constant 0 : i32
    %c0_i32_2 = arith.constant 0 : i32
    return %c0_i32, %c0_i32_0, %c0_i32_1 : i32, i32, i32
  }
  func.func @transform_1(%arg0: i32) -> (i32, i32) {
    %c0_i32 = arith.constant 0 : i32
    %c0_i32_0 = arith.constant 0 : i32
    %c0_i32_1 = arith.constant 0 : i32
    return %c0_i32, %c0_i32_0 : i32, i32
  }
  func.func @transform_2(%arg0: i32) -> (i32, i32) {
    %c0_i32 = arith.constant 0 : i32
    %c0_i32_0 = arith.constant 0 : i32
    %c0_i32_1 = arith.constant 0 : i32
    return %c0_i32, %c0_i32_0 : i32, i32
  }
  func.func @transform_3(%arg0: i32) -> (i32, i32) {
    %c0_i32 = arith.constant 0 : i32
    %c0_i32_0 = arith.constant 0 : i32
    %c0_i32_1 = arith.constant 0 : i32
    return %c0_i32, %c0_i32_0 : i32, i32
  }
}

</mosaic_0001>

<bundles_post_ra>
// kernel: net_google_head.1
= control target key start
LH: loop header
LB: loop body
LE: loop exit
PB: predicated region body
PF: predicated region fallthrough
CT: control target
= control target key end

     0   :  { %vm272_vm0 = vcmask 130048   ;;  %s4970_s0 = inlined_call_operand.vmem [shape: f32[2,1024,16], index: 0, kind: input, shape index: {}]   ;;  %s4971_s1 = inlined_call_operand.vmem [shape: bf16[16,1024], index: 1, kind: input, shape index: {}]   ;;  %s4972_s2 = inlined_call_operand.vmem [shape: f32[1,16], index: 2, kind: input, shape index: {}]   ;;  %s4973_s3 = inlined_call_operand.hbm [shape: f32[2,16], index: 3, kind: output, shape index: {}]  }
   0x1   :  { %v18_v0 = vld [vmem:[%s4970_s0 + $0x10] sm:$0xff]  ;;  %v16_v1 = vld [vmem:[%s4970_s0] sm:$0xff]  ;;  %v19_v2 = vld [vmem:[%s4970_s0 + $0x18] sm:$0xff] }
   0x2   :  { %v279_v3 = vsel %vm272_vm0, %v18_v0, 0.0  ;;  %v273_v4 = vsel %vm272_vm0, %v16_v1, 0.0  ;;  %v17_v5 = vld [vmem:[%s4970_s0 + $0x8] sm:$0xff]  ;;  %v282_v6 = vsel %vm272_vm0, %v19_v2, 0.0  ;;  %v20_v9 = vld [vmem:[%s4970_s0 + $0x20] sm:$0xff]  ;;  %v23_v12 = vld [vmem:[%s4970_s0 + $0x38] sm:$0xff] }
   0x3   :  { %280 = vadd.xlane.f32.xlu1 %v279_v3  ;;  %274 = vadd.xlane.f32.xlu0 %v273_v4  ;;  %v276_v7 = vsel %vm272_vm0, %v17_v5, 0.0  ;;  %v21_v8 = vld [vmem:[%s4970_s0 + $0x28] sm:$0xff]  ;;  %v285_v11 = vsel %vm272_vm0, %v20_v9, 0.0  ;;  %v22_v13 = vld [vmem:[%s4970_s0 + $0x30] sm:$0xff]  ;;  %v294_v14 = vsel %vm272_vm0, %v23_v12, 0.0  ;;  %v24_v17 = vld [vmem:[%s4970_s0 + $0x40] sm:$0xff] }
   0x4   :  { %v288_v10 = vsel %vm272_vm0, %v21_v8, 0.0  ;;  %v291_v15 = vsel %vm272_vm0, %v22_v13, 0.0  ;;  %v25_v16 = vld [vmem:[%s4970_s0 + $0x48] sm:$0xff]  ;;  %v297_v19 = vsel %vm272_vm0, %v24_v17, 0.0  ;;  %v27_v20 = vld [vmem:[%s4970_s0 + $0x58] sm:$0xff]  ;;  %v26_v21 = vld [vmem:[%s4970_s0 + $0x50] sm:$0xff] }
   0x5   :  { %v300_v18 = vsel %vm272_vm0, %v25_v16, 0.0  ;;  %v306_v22 = vsel %vm272_vm0, %v27_v20, 0.0  ;;  %v303_v23 = vsel %vm272_vm0, %v26_v21, 0.0  ;;  %v29_v24 = vld [vmem:[%s4970_s0 + $0x68] sm:$0xff]  ;;  %v28_v25 = vld [vmem:[%s4970_s0 + $0x60] sm:$0xff]  ;;  %v31_v28 = vld [vmem:[%s4970_s0 + $0x78] sm:$0xff] }
   0x6   :  { %v312_v26 = vsel %vm272_vm0, %v29_v24, 0.0  ;;  %v309_v27 = vsel %vm272_vm0, %v28_v25, 0.0  ;;  %v30_v29 = vld [vmem:[%s4970_s0 + $0x70] sm:$0xff]  ;;  %v318_v30 = vsel %vm272_vm0, %v31_v28, 0.0 }
   0x7   :  { %283 = vadd.xlane.f32.xlu1 %v282_v6  ;;  %277 = vadd.xlane.f32.xlu0 %v276_v7  ;;  %v315_v31 = vsel %vm272_vm0, %v30_v29, 0.0 }
   0xb   :  { %289 = vadd.xlane.f32.xlu1 %v288_v10  ;;  %286 = vadd.xlane.f32.xlu0 %v285_v11 }
   0xf   :  { %295 = vadd.xlane.f32.xlu1 %v294_v14  ;;  %292 = vadd.xlane.f32.xlu0 %v291_v15 }
  0x13   :  { %301 = vadd.xlane.f32.xlu1 %v300_v18  ;;  %298 = vadd.xlane.f32.xlu0 %v297_v19 }
  0x17   :  { %307 = vadd.xlane.f32.xlu1 %v306_v22  ;;  %304 = vadd.xlane.f32.xlu0 %v303_v23 }
  0x1b   :  { %313 = vadd.xlane.f32.xlu1 %v312_v26  ;;  %310 = vadd.xlane.f32.xlu0 %v309_v27 }
  0x1c   :  { %8 = vsyncpa [#allocation3], 0  ;;  %v33_v32 = vld [vmem:[%s4970_s0 + $0x88] sm:$0xff]  ;;  %v32_v33 = vld [vmem:[%s4970_s0 + $0x80] sm:$0xff]  ;;  %vm1579_vm1 = vcmask 130112   ;;  %vm1586_vm2 = vcmask 195712  }
  0x1d   :  { %v324_v34 = vsel %vm272_vm0, %v33_v32, 0.0  ;;  %v321_v35 = vsel %vm272_vm0, %v32_v33, 0.0  ;;  %v35_v36 = vld [vmem:[%s4970_s0 + $0x98] sm:$0xff]  ;;  %v34_v37 = vld [vmem:[%s4970_s0 + $0x90] sm:$0xff]  ;;  %v37_v40 = vld [vmem:[%s4970_s0 + $0xa8] sm:$0xff]  ;;  %vm1593_vm3 = vcmask 261312  }
  0x1e   :  { %v330_v38 = vsel %vm272_vm0, %v35_v36, 0.0  ;;  %v327_v39 = vsel %vm272_vm0, %v34_v37, 0.0  ;;  %v36_v41 = vld [vmem:[%s4970_s0 + $0xa0] sm:$0xff]  ;;  %v336_v42 = vsel %vm272_vm0, %v37_v40, 0.0  ;;  %v39_v44 = vld [vmem:[%s4970_s0 + $0xb8] sm:$0xff]  ;;  %v38_v45 = vld [vmem:[%s4970_s0 + $0xb0] sm:$0xff] }
  0x1f   :  { %319 = vadd.xlane.f32.xlu1 %v318_v30  ;;  %316 = vadd.xlane.f32.xlu0 %v315_v31  ;;  %v333_v43 = vsel %vm272_vm0, %v36_v41, 0.0  ;;  %v342_v46 = vsel %vm272_vm0, %v39_v44, 0.0  ;;  %v339_v47 = vsel %vm272_vm0, %v38_v45, 0.0  ;;  %v41_v48 = vld [vmem:[%s4970_s0 + $0xc8] sm:$0xff]  ;;  %v40_v49 = vld [vmem:[%s4970_s0 + $0xc0] sm:$0xff]  ;;  %v43_v52 = vld [vmem:[%s4970_s0 + $0xd8] sm:$0xff] }
  0x20   :  { %v348_v50 = vsel %vm272_vm0, %v41_v48, 0.0  ;;  %v345_v51 = vsel %vm272_vm0, %v40_v49, 0.0  ;;  %v42_v53 = vld [vmem:[%s4970_s0 + $0xd0] sm:$0xff]  ;;  %v354_v54 = vsel %vm272_vm0, %v43_v52, 0.0  ;;  %v45_v56 = vld [vmem:[%s4970_s0 + $0xe8] sm:$0xff]  ;;  %v44_v57 = vld [vmem:[%s4970_s0 + $0xe0] sm:$0xff] }
  0x21   :  { %v351_v55 = vsel %vm272_vm0, %v42_v53, 0.0  ;;  %v360_v58 = vsel %vm272_vm0, %v45_v56, 0.0  ;;  %v357_v59 = vsel %vm272_vm0, %v44_v57, 0.0  ;;  %v47_v60 = vld [vmem:[%s4970_s0 + $0xf8] sm:$0xff]  ;;  %v46_v61 = vld [vmem:[%s4970_s0 + $0xf0] sm:$0xff]  ;;  %v49_v0 = vld [vmem:[%s4970_s0 + $0x108] sm:$0xff] }
  0x22   :  { %v366_v62 = vsel %vm272_vm0, %v47_v60, 0.0  ;;  %v363_v63 = vsel %vm272_vm0, %v46_v61, 0.0  ;;  %v48_v1 = vld [vmem:[%s4970_s0 + $0x100] sm:$0xff]  ;;  %v372_v2 = vsel %vm272_vm0, %v49_v0, 0.0  ;;  %v51_v4 = vld [vmem:[%s4970_s0 + $0x118] sm:$0xff]  ;;  %v50_v5 = vld [vmem:[%s4970_s0 + $0x110] sm:$0xff] }
  0x23   :  { %325 = vadd.xlane.f32.xlu1 %v324_v34  ;;  %322 = vadd.xlane.f32.xlu0 %v321_v35  ;;  %v369_v3 = vsel %vm272_vm0, %v48_v1, 0.0  ;;  %v378_v6 = vsel %vm272_vm0, %v51_v4, 0.0  ;;  %v375_v7 = vsel %vm272_vm0, %v50_v5, 0.0  ;;  %v53_v8 = vld [vmem:[%s4970_s0 + $0x128] sm:$0xff]  ;;  %v52_v9 = vld [vmem:[%s4970_s0 + $0x120] sm:$0xff]  ;;  %v55_v12 = vld [vmem:[%s4970_s0 + $0x138] sm:$0xff] }
  0x24   :  { %v384_v10 = vsel %vm272_vm0, %v53_v8, 0.0  ;;  %v381_v11 = vsel %vm272_vm0, %v52_v9, 0.0  ;;  %v54_v13 = vld [vmem:[%s4970_s0 + $0x130] sm:$0xff]  ;;  %v390_v14 = vsel %vm272_vm0, %v55_v12, 0.0  ;;  %v57_v16 = vld [vmem:[%s4970_s0 + $0x148] sm:$0xff]  ;;  %v56_v17 = vld [vmem:[%s4970_s0 + $0x140] sm:$0xff] }
  0x25   :  { %v387_v15 = vsel %vm272_vm0, %v54_v13, 0.0  ;;  %v396_v18 = vsel %vm272_vm0, %v57_v16, 0.0  ;;  %v393_v19 = vsel %vm272_vm0, %v56_v17, 0.0  ;;  %v59_v20 = vld [vmem:[%s4970_s0 + $0x158] sm:$0xff]  ;;  %v58_v21 = vld [vmem:[%s4970_s0 + $0x150] sm:$0xff]  ;;  %v61_v24 = vld [vmem:[%s4970_s0 + $0x168] sm:$0xff] }
  0x26   :  { %v402_v22 = vsel %vm272_vm0, %v59_v20, 0.0  ;;  %v399_v23 = vsel %vm272_vm0, %v58_v21, 0.0  ;;  %v60_v25 = vld [vmem:[%s4970_s0 + $0x160] sm:$0xff]  ;;  %v408_v26 = vsel %vm272_vm0, %v61_v24, 0.0  ;;  %v63_v28 = vld [vmem:[%s4970_s0 + $0x178] sm:$0xff]  ;;  %v62_v29 = vld [vmem:[%s4970_s0 + $0x170] sm:$0xff] }
  0x27   :  { %331 = vadd.xlane.f32.xlu1 %v330_v38  ;;  %328 = vadd.xlane.f32.xlu0 %v327_v39  ;;  %v405_v27 = vsel %vm272_vm0, %v60_v25, 0.0  ;;  %v414_v30 = vsel %vm272_vm0, %v63_v28, 0.0  ;;  %v411_v31 = vsel %vm272_vm0, %v62_v29, 0.0  ;;  %v65_v32 = vld [vmem:[%s4970_s0 + $0x188] sm:$0xff]  ;;  %v64_v33 = vld [vmem:[%s4970_s0 + $0x180] sm:$0xff]  ;;  %v67_v36 = vld [vmem:[%s4970_s0 + $0x198] sm:$0xff] }
  0x28   :  { %v420_v34 = vsel %vm272_vm0, %v65_v32, 0.0  ;;  %v417_v35 = vsel %vm272_vm0, %v64_v33, 0.0  ;;  %v66_v37 = vld [vmem:[%s4970_s0 + $0x190] sm:$0xff]  ;;  %v426_v38 = vsel %vm272_vm0, %v67_v36, 0.0  ;;  %v69_v40 = vld [vmem:[%s4970_s0 + $0x1a8] sm:$0xff]  ;;  %v68_v41 = vld [vmem:[%s4970_s0 + $0x1a0] sm:$0xff] }
  0x29   :  { %v423_v39 = vsel %vm272_vm0, %v66_v37, 0.0  ;;  %v71_v44 = vld [vmem:[%s4970_s0 + $0x1b8] sm:$0xff]  ;;  %v70_v45 = vld [vmem:[%s4970_s0 + $0x1b0] sm:$0xff]  ;;  %v73_v48 = vld [vmem:[%s4970_s0 + $0x1c8] sm:$0xff]  ;;  %vm1600_vm4 = vcmask 326912   ;;  %vm1607_vm5 = vcmask 392512  }
  0x2a   :  { %v72_v49 = vld [vmem:[%s4970_s0 + $0x1c0] sm:$0xff]  ;;  %v75_v52 = vld [vmem:[%s4970_s0 + $0x1d8] sm:$0xff]  ;;  %v74_v53 = vld [vmem:[%s4970_s0 + $0x1d0] sm:$0xff]  ;;  %vm1614_vm6 = vcmask 458112   ;;  %vm4974_vm7 = vcmask 523712   ;;  %vm1628_vm8 = vcmask 589312  }
  0x2b   :  { %337 = vadd.xlane.f32.xlu1 %v336_v42  ;;  %334 = vadd.xlane.f32.xlu0 %v333_v43  ;;  %v432_v42 = vsel %vm272_vm0, %v69_v40, 0.0  ;;  %v429_v43 = vsel %vm272_vm0, %v68_v41, 0.0  ;;  %v77_v56 = vld [vmem:[%s4970_s0 + $0x1e8] sm:$0xff]  ;;  %v76_v57 = vld [vmem:[%s4970_s0 + $0x1e0] sm:$0xff]  ;;  %v79_v60 = vld [vmem:[%s4970_s0 + $0x1f8] sm:$0xff]  ;;  %vm1635_vm9 = vcmask 654912  }
  0x2c   :  { %v78_v61 = vld [vmem:[%s4970_s0 + $0x1f0] sm:$0xff]  ;;  %v81_v0 = vld [vmem:[%s4970_s0 + $0x208] sm:$0xff]  ;;  %v80_v1 = vld [vmem:[%s4970_s0 + $0x200] sm:$0xff]  ;;  %vm1642_vm10 = vcmask 720512   ;;  %vm1649_vm11 = vcmask 786112   ;;  %vm1656_vm12 = vcmask 851712  }
  0x2d   :  { %v83_v4 = vld [vmem:[%s4970_s0 + $0x218] sm:$0xff]  ;;  %v82_v5 = vld [vmem:[%s4970_s0 + $0x210] sm:$0xff]  ;;  %v85_v8 = vld [vmem:[%s4970_s0 + $0x228] sm:$0xff]  ;;  %vm1663_vm13 = vcmask 917312   ;;  %vm1670_vm14 = vcmask 982912   ;;  %vm1677_vm15 = vcmask 1048512  }
  0x2e   :  { %v84_v9 = vld [vmem:[%s4970_s0 + $0x220] sm:$0xff]  ;;  %v87_v12 = vld [vmem:[%s4970_s0 + $0x238] sm:$0xff]  ;;  %v86_v13 = vld [vmem:[%s4970_s0 + $0x230] sm:$0xff]  ;;  %s3149_s27 = smov [#allocation2]  }
  0x2f   :  { %343 = vadd.xlane.f32.xlu1 %v342_v46  ;;  %340 = vadd.xlane.f32.xlu0 %v339_v47  ;;  %v438_v46 = vsel %vm272_vm0, %v71_v44, 0.0  ;;  %v435_v47 = vsel %vm272_vm0, %v70_v45, 0.0  ;;  %v483_v16 = vsel %vm272_vm0, %v86_v13, 0.0  ;;  %v89_v17 = vld [vmem:[%s4970_s0 + $0x248] sm:$0xff]  ;;  %v90_v28 = vld [vmem:[%s4970_s0 + $0x250] sm:$0xff]  ;;  %v92_v41 = vld [vmem:[%s4970_s0 + $0x260] sm:$0xff] }
  0x30   :  { %v93_v40 = vld [vmem:[%s4970_s0 + $0x268] sm:$0xff]  ;;  %s3097_s28 = sshll.u32 %s3149_s27, 4  ;;  %s3098_s28 = int_to_ptr.vmem [resolvable:$true] %s3097_s28 }
  0x31   :  { %s3125_s29 = scalar_lea.vmem %s3098_s28, 32  ;;  %p3130_p1 = scmp.lt.s32.totalorder %s3098_s28, %s3098_s28 }
  0x32   :  { %p3126_p0 = scmp.ne.s32.totalorder %s3098_s28, %s3125_s29  ;;  %p3131_p2 = scmp.lt.s32.totalorder %s3125_s29, %s3125_s29 }
  0x33   :  { %349 = vadd.xlane.f32.xlu1 %v348_v50  ;;  %346 = vadd.xlane.f32.xlu0 %v345_v51  ;;  %v444_v50 = vsel %vm272_vm0, %v73_v48, 0.0  ;;  %v441_v51 = vsel %vm272_vm0, %v72_v49, 0.0  ;;  %v95_v49 = vld [vmem:[%s4970_s0 + $0x278] sm:$0xff] }
  0x34   :  { %p3132_p3 = por %p3131_p2, %p3130_p1 }
  0x36   :  { %p3133_p4 = pnand %p3132_p3, %p3126_p0 }
  0x37   :  { %355 = vadd.xlane.f32.xlu1 %v354_v54  ;;  %352 = vadd.xlane.f32.xlu0 %v351_v55  ;;  %v450_v54 = vsel %vm272_vm0, %v75_v52, 0.0  ;;  %v447_v55 = vsel %vm272_vm0, %v74_v53, 0.0 }
  0x3b   :  { %361 = vadd.xlane.f32.xlu1 %v360_v58  ;;  %358 = vadd.xlane.f32.xlu0 %v357_v59  ;;  %v456_v58 = vsel %vm272_vm0, %v77_v56, 0.0  ;;  %v453_v59 = vsel %vm272_vm0, %v76_v57, 0.0 }
  0x3f   :  { %367 = vadd.xlane.f32.xlu1 %v366_v62  ;;  %364 = vadd.xlane.f32.xlu0 %v363_v63  ;;  %v462_v62 = vsel %vm272_vm0, %v79_v60, 0.0  ;;  %v459_v63 = vsel %vm272_vm0, %v78_v61, 0.0 }
  0x43   :  { %373 = vadd.xlane.f32.xlu1 %v372_v2  ;;  %370 = vadd.xlane.f32.xlu0 %v369_v3  ;;  %v468_v2 = vsel %vm272_vm0, %v81_v0, 0.0  ;;  %v465_v3 = vsel %vm272_vm0, %v80_v1, 0.0 }
  0x47   :  { %379 = vadd.xlane.f32.xlu1 %v378_v6  ;;  %376 = vadd.xlane.f32.xlu0 %v375_v7  ;;  %v474_v6 = vsel %vm272_vm0, %v83_v4, 0.0  ;;  %v471_v7 = vsel %vm272_vm0, %v82_v5, 0.0  ;;  %v97_v4 = vld [vmem:[%s4970_s0 + $0x288] sm:$0xff] }
  0x4b   :  { %385 = vadd.xlane.f32.xlu1 %v384_v10  ;;  %382 = vadd.xlane.f32.xlu0 %v381_v11  ;;  %v480_v10 = vsel %vm272_vm0, %v85_v8, 0.0  ;;  %v477_v11 = vsel %vm272_vm0, %v84_v9, 0.0 }
  0x4f   :  { %391 = vadd.xlane.f32.xlu1 %v390_v14  ;;  %388 = vadd.xlane.f32.xlu0 %v387_v15  ;;  %v1568_v14 = vlaneseq  ;;  %v486_v15 = vsel %vm272_vm0, %v87_v12, 0.0 }
  0x51   :  { %v3466_v20 = vshrl.u32 %v1568_v14, 7 }
  0x53   :  { %397 = vadd.xlane.f32.xlu1 %v396_v18  ;;  %394 = vadd.xlane.f32.xlu0 %v393_v19  ;;  %v88_v18 = vld [vmem:[%s4970_s0 + $0x240] sm:$0xff]  ;;  %v3464_v19 = vand.u32 127, %v1568_v14 }
  0x54   :  { %v489_v24 = vsel %vm272_vm0, %v88_v18, 0.0 }
  0x55   :  { %v1581_v25 = vadd.s32 4294967280, %v3464_v19  ;;  %v1588_v29 = vadd.s32 4294967272, %v3464_v19  ;;  %v1609_v44 = vadd.s32 4294967248, %v3464_v19 }
  0x57   :  { %403 = vadd.xlane.f32.xlu1 %v402_v22  ;;  %400 = vadd.xlane.f32.xlu0 %v399_v23  ;;  %v492_v23 = vsel %vm272_vm0, %v89_v17, 0.0  ;;  %v3487_v36 = vsub.s32 %v1581_v25, %v3466_v20  ;;  %v516_v17 = vsel %vm272_vm0, %v97_v4, 0.0 }
  0x5b   :  { %409 = vadd.xlane.f32.xlu1 %v408_v26  ;;  %406 = vadd.xlane.f32.xlu0 %v405_v27  ;;  %v1574_v26 = vadd.s32 4294967288, %v3464_v19  ;;  %v91_v27 = vld [vmem:[%s4970_s0 + $0x258] sm:$0xff] }
  0x5c   :  { %v498_v33 = vsel %vm272_vm0, %v91_v27, 0.0 }
  0x5f   :  { %415 = vadd.xlane.f32.xlu1 %v414_v30  ;;  %412 = vadd.xlane.f32.xlu0 %v411_v31  ;;  %v3481_v30 = vsub.s32 %v3464_v19, %v3466_v20 }
  0x63   :  { %421 = vadd.xlane.f32.xlu1 %v420_v34  ;;  %418 = vadd.xlane.f32.xlu0 %v417_v35  ;;  %v495_v34 = vsel %vm272_vm0, %v90_v28, 0.0  ;;  %v1595_v35 = vadd.s32 4294967264, %v3464_v19 }
  0x65   :  { %v3510_v52 = vsub.s32 %v1595_v35, %v3466_v20 }
  0x67   :  { %427 = vadd.xlane.f32.xlu1 %v426_v38  ;;  %424 = vadd.xlane.f32.xlu0 %v423_v39  ;;  %v3490_v38 = vsub.s32 %v1574_v26, %v3466_v20 }
  0x6b   :  { %433 = vadd.xlane.f32.xlu1 %v432_v42  ;;  %430 = vadd.xlane.f32.xlu0 %v429_v43  ;;  %v3499_v42 = vsub.s32 %v1588_v29, %v3466_v20  ;;  %v1602_v43 = vadd.s32 4294967256, %v3464_v19  ;;  %v1637_v29 = vadd.s32 4294967216, %v3464_v19 }
  0x6d   :  { %v3519_v60 = vsub.s32 %v1602_v43, %v3466_v20 }
  0x6f   :  { %439 = vadd.xlane.f32.xlu1 %v438_v46  ;;  %436 = vadd.xlane.f32.xlu0 %v435_v47 }
  0x73   :  { %445 = vadd.xlane.f32.xlu1 %v444_v50  ;;  %442 = vadd.xlane.f32.xlu0 %v441_v51  ;;  %v94_v50 = vld [vmem:[%s4970_s0 + $0x270] sm:$0xff] }
  0x77   :  { %451 = vadd.xlane.f32.xlu1 %v450_v54  ;;  %448 = vadd.xlane.f32.xlu0 %v447_v55  ;;  %v504_v54 = vsel %vm272_vm0, %v93_v40, 0.0  ;;  %v501_v55 = vsel %vm272_vm0, %v92_v41, 0.0 }
  0x7b   :  { %457 = vadd.xlane.f32.xlu1 %v456_v58  ;;  %454 = vadd.xlane.f32.xlu0 %v453_v59  ;;  %v1616_v59 = vadd.s32 4294967240, %v3464_v19 }
  0x7d   :  { %v3539_v13 = vsub.s32 %v1616_v59, %v3466_v20 }
  0x7f   :  { %463 = vadd.xlane.f32.xlu1 %v462_v62  ;;  %460 = vadd.xlane.f32.xlu0 %v459_v63  ;;  %v510_v62 = vsel %vm272_vm0, %v95_v49, 0.0  ;;  %v507_v63 = vsel %vm272_vm0, %v94_v50, 0.0  ;;  %v1651_v50 = vadd.s32 4294967200, %v3464_v19 }
  0x83   :  { %469 = vadd.xlane.f32.xlu1 %v468_v2  ;;  %466 = vadd.xlane.f32.xlu0 %v465_v3  ;;  %v3526_v2 = vsub.s32 %v1609_v44, %v3466_v20  ;;  %v1623_v3 = vadd.s32 4294967232, %v3464_v19 }
  0x87   :  { %475 = vadd.xlane.f32.xlu1 %v474_v6  ;;  %472 = vadd.xlane.f32.xlu0 %v471_v7 }
  0x8b   :  { %481 = vadd.xlane.f32.xlu1 %v480_v10  ;;  %478 = vadd.xlane.f32.xlu0 %v477_v11  ;;  %v1630_v10 = vadd.s32 4294967224, %v3464_v19  ;;  %v96_v11 = vld [vmem:[%s4970_s0 + $0x280] sm:$0xff] }
  0x8d   :  { %v3553_v27 = vsub.s32 %v1630_v10, %v3466_v20  ;;  %v1672_v10 = vadd.s32 4294967176, %v3464_v19 }
  0x8f   :  { %487 = vadd.xlane.f32.xlu1 %v486_v15  ;;  %484 = vadd.xlane.f32.xlu0 %v483_v16 }
  0x90   :  { %v281_v21 = vpop.xlane.xlu1 %280  ;;  %v275_v22 = vpop.xlane.xlu0 %274 }
  0x93   :  { %493 = vadd.xlane.f32.xlu1 %v492_v23  ;;  %490 = vadd.xlane.f32.xlu0 %v489_v24  ;;  %v513_v23 = vsel %vm272_vm0, %v96_v11, 0.0  ;;  %v99_v24 = vld [vmem:[%s4970_s0 + $0x298] sm:$0xff] }
  0x94   :  { %v284_v31 = vpop.xlane.xlu1 %283  ;;  %v278_v32 = vpop.xlane.xlu0 %277  ;;  %v103_v11 = vld [vmem:[%s4970_s0 + $0x2b8] sm:$0xff] }
  0x95   :  { %v1042_v37 = vpack.c.bf16 %v284_v31, %v281_v21  ;;  %v1041_v39 = vpack.c.bf16 %v278_v32, %v275_v22  ;;  %v3545_v22 = vsub.s32 %v1623_v3, %v3466_v20  ;;  %v1644_v31 = vadd.s32 4294967208, %v3464_v19  ;;  %v98_v32 = vld [vmem:[%s4970_s0 + $0x290] sm:$0xff] }
  0x96   :  { %v519_v44 = vsel %vm272_vm0, %v98_v32, 0.0  ;;  %v3588_v3 = vsub.s32 %v1651_v50, %v3466_v20  ;;  %v104_v32 = vld [vmem:[%s4970_s0 + $0x2c0] sm:$0xff] }
  0x97   :  { %v1314_v45 = vunpack.c.l.b16 %v1042_v37  ;;  %v1315_v46 = vunpack.c.h.b16 %v1042_v37  ;;  %v1312_v47 = vunpack.c.l.b16 %v1041_v39  ;;  %v1313_v48 = vunpack.c.h.b16 %v1041_v39  ;;  %499 = vadd.xlane.f32.xlu1 %v498_v33  ;;  %496 = vadd.xlane.f32.xlu0 %v495_v34 }
  0x98   :  { %v290_v51 = vpop.xlane.xlu1 %289  ;;  %v287_v53 = vpop.xlane.xlu0 %286  ;;  %v522_v39 = vsel %vm272_vm0, %v99_v24, 0.0 }
  0x99   :  { %v1585_v56 = vrot.slane %v1314_v45, %v3487_v36  ;;  %v1573_v57 = vrot.slane %v1312_v47, %v3481_v30  ;;  %v1578_v58 = vrot.slane %v1313_v48, %v3490_v38  ;;  %v1043_v61 = vpack.c.bf16 %v290_v51, %v287_v53  ;;  %v101_v45 = vld [vmem:[%s4970_s0 + $0x2a8] sm:$0xff]  ;;  %v100_v53 = vld [vmem:[%s4970_s0 + $0x2a0] sm:$0xff] }
  0x9a   :  { %v1592_v0 = vrot.slane %v1315_v46, %v3499_v42  ;;  %v3571_v48 = vsub.s32 %v1637_v29, %v3466_v20  ;;  %v1658_v51 = vadd.s32 4294967192, %v3464_v19 }
  0x9b   :  { %v1580_v1 = vsel %vm1579_vm1, %v1578_v58, %v1573_v57  ;;  %505 = vadd.xlane.f32.xlu1 %v504_v54  ;;  %502 = vadd.xlane.f32.xlu0 %v501_v55  ;;  %v1316_v6 = vunpack.c.l.b16 %v1043_v61  ;;  %v1317_v7 = vunpack.c.h.b16 %v1043_v61  ;;  %v528_v58 = vsel %vm272_vm0, %v101_v45, 0.0 }
  0x9c   :  { %v1587_v5 = vsel %vm1586_vm2, %v1585_v56, %v1580_v1  ;;  %v296_v8 = vpop.xlane.xlu1 %295  ;;  %v293_v9 = vpop.xlane.xlu0 %292  ;;  %v3581_v56 = vsub.s32 %v1644_v31, %v3466_v20  ;;  %v3591_v4 = vsub.s32 %v1658_v51, %v3466_v20  ;;  %v105_v31 = vld [vmem:[%s4970_s0 + $0x2c8] sm:$0xff] }
  0x9d   :  { %v1594_v12 = vsel %vm1593_vm3, %v1592_v0, %v1587_v5  ;;  %v1044_v14 = vpack.c.bf16 %v296_v8, %v293_v9  ;;  %v1599_v15 = vrot.slane %v1316_v6, %v3510_v52  ;;  %v1606_v16 = vrot.slane %v1317_v7, %v3519_v60 }
  0x9e   :  { %v1665_v6 = vadd.s32 4294967184, %v3464_v19 }
  0x9f   :  { %v1318_v18 = vunpack.c.l.b16 %v1044_v14  ;;  %v1319_v21 = vunpack.c.h.b16 %v1044_v14  ;;  %511 = vadd.xlane.f32.xlu1 %v510_v62  ;;  %508 = vadd.xlane.f32.xlu0 %v507_v63  ;;  %v1601_v25 = vsel %vm1600_vm4, %v1599_v15, %v1594_v12  ;;  %v525_v63 = vsel %vm272_vm0, %v100_v53, 0.0  ;;  %v102_v12 = vld [vmem:[%s4970_s0 + $0x2b0] sm:$0xff] }
  0xa0   :  { %v302_v26 = vpop.xlane.xlu1 %301  ;;  %v299_v28 = vpop.xlane.xlu0 %298  ;;  %v1608_v33 = vsel %vm1607_vm5, %v1606_v16, %v1601_v25  ;;  %v3606_v19 = vsub.s32 %v1665_v6, %v3466_v20  ;;  %v531_v24 = vsel %vm272_vm0, %v102_v12, 0.0 }
  0xa1   :  { %v1613_v34 = vrot.slane %v1318_v18, %v3526_v2  ;;  %v1620_v35 = vrot.slane %v1319_v21, %v3539_v13  ;;  %v1045_v37 = vpack.c.bf16 %v302_v26, %v299_v28  ;;  %v3613_v28 = vsub.s32 %v1672_v10, %v3466_v20 }
  0xa3   :  { %v1615_v40 = vsel %vm1614_vm6, %v1613_v34, %v1608_v33  ;;  %v1320_v41 = vunpack.c.l.b16 %v1045_v37  ;;  %v1321_v43 = vunpack.c.h.b16 %v1045_v37  ;;  %517 = vadd.xlane.f32.xlu1 %v516_v17  ;;  %514 = vadd.xlane.f32.xlu0 %v513_v23  ;;  %v534_v23 = vsel %vm272_vm0, %v103_v11, 0.0 }
  0xa4   :  { %v1622_v46 = vsel %vm4974_vm7, %v1620_v35, %v1615_v40  ;;  %v308_v47 = vpop.xlane.xlu1 %307  ;;  %v305_v49 = vpop.xlane.xlu0 %304  ;;  %v540_v40 = vsel %vm272_vm0, %v105_v31, 0.0 }
  0xa5   :  { %v1627_v54 = vrot.slane %v1320_v41, %v3545_v22  ;;  %v1634_v55 = vrot.slane %v1321_v43, %v3553_v27  ;;  %v1046_v57 = vpack.c.bf16 %v308_v47, %v305_v49  ;;  %v537_v41 = vsel %vm272_vm0, %v104_v32, 0.0  ;;  %v106_v47 = vld [vmem:[%s4970_s0 + $0x2d0] sm:$0xff] }
  0xa7   :  { %v1629_v59 = vsel %vm1628_vm8, %v1627_v54, %v1622_v46  ;;  %v1322_v61 = vunpack.c.l.b16 %v1046_v57  ;;  %v1323_v62 = vunpack.c.h.b16 %v1046_v57  ;;  %523 = vadd.xlane.f32.xlu1 %v522_v39  ;;  %520 = vadd.xlane.f32.xlu0 %v519_v44  ;;  %v107_v46 = vld [vmem:[%s4970_s0 + $0x2d8] sm:$0xff] }
  0xa8   :  { %v1636_v0 = vsel %vm1635_vm9, %v1634_v55, %v1629_v59  ;;  %v314_v1 = vpop.xlane.xlu1 %313  ;;  %v311_v5 = vpop.xlane.xlu0 %310  ;;  %v546_v54 = vsel %vm272_vm0, %v107_v46, 0.0  ;;  %v543_v55 = vsel %vm272_vm0, %v106_v47, 0.0  ;;  %v160_v59 = vld [vmem:[%s4970_s0 + $0x480] sm:$0xff] }
  0xa9   :  { %v1641_v7 = vrot.slane %v1322_v61, %v3571_v48  ;;  %v1648_v8 = vrot.slane %v1323_v62, %v3581_v56  ;;  %v1047_v9 = vpack.c.bf16 %v314_v1, %v311_v5  ;;  %v108_v61 = vld [vmem:[%s4970_s0 + $0x2e0] sm:$0xff] }
  0xab   :  { %v1643_v14 = vsel %vm1642_vm10, %v1641_v7, %v1636_v0  ;;  %v1324_v15 = vunpack.c.l.b16 %v1047_v9  ;;  %v1325_v16 = vunpack.c.h.b16 %v1047_v9  ;;  %529 = vadd.xlane.f32.xlu1 %v528_v58  ;;  %526 = vadd.xlane.f32.xlu0 %v525_v63  ;;  %v549_v9 = vsel %vm272_vm0, %v108_v61, 0.0 }
  0xac   :  { %v1650_v17 = vsel %vm1649_vm11, %v1648_v8, %v1643_v14  ;;  %v320_v18 = vpop.xlane.xlu1 %319  ;;  %v317_v21 = vpop.xlane.xlu0 %316  ;;  %v705_v8 = vsel %vm272_vm0, %v160_v59, 0.0  ;;  %v144_v14 = vld [vmem:[%s4970_s0 + $0x400] sm:$0xff] }
  0xad   :  { %v1655_v25 = vrot.slane %v1324_v15, %v3588_v3  ;;  %v1662_v26 = vrot.slane %v1325_v16, %v3591_v4  ;;  %v1048_v29 = vpack.c.bf16 %v320_v18, %v317_v21  ;;  %v161_v15 = vld [vmem:[%s4970_s0 + $0x488] sm:$0xff] }
  0xaf   :  { %v1657_v33 = vsel %vm1656_vm12, %v1655_v25, %v1650_v17  ;;  %v1326_v34 = vunpack.c.l.b16 %v1048_v29  ;;  %v1327_v35 = vunpack.c.h.b16 %v1048_v29  ;;  %535 = vadd.xlane.f32.xlu1 %v534_v23  ;;  %532 = vadd.xlane.f32.xlu0 %v531_v24  ;;  %v708_v29 = vsel %vm272_vm0, %v161_v15, 0.0 }
  0xb0   :  { %v1664_v37 = vsel %vm1663_vm13, %v1662_v26, %v1657_v33  ;;  %v326_v39 = vpop.xlane.xlu1 %325  ;;  %v323_v20 = vpop.xlane.xlu0 %322  ;;  %v657_v26 = vsel %vm272_vm0, %v144_v14, 0.0 }
  0xb1   :  { %v1669_v43 = vrot.slane %v1326_v34, %v3606_v19  ;;  %v1676_v44 = vrot.slane %v1327_v35, %v3613_v28  ;;  %v1049_v45 = vpack.c.bf16 %v326_v39, %v323_v20  ;;  %v162_v34 = vld [vmem:[%s4970_s0 + $0x490] sm:$0xff]  ;;  %v145_v35 = vld [vmem:[%s4970_s0 + $0x408] sm:$0xff] }
  0xb3   :  { %v1328_v49 = vunpack.c.l.b16 %v1049_v45  ;;  %v1329_v50 = vunpack.c.h.b16 %v1049_v45  ;;  %541 = vadd.xlane.f32.xlu1 %v540_v40  ;;  %538 = vadd.xlane.f32.xlu0 %v537_v41  ;;  %v1671_v57 = vsel %vm1670_vm14, %v1669_v43, %v1664_v37  ;;  %v660_v45 = vsel %vm272_vm0, %v145_v35, 0.0 }
  0xb4   :  { %v332_v51 = vpop.xlane.xlu1 %331  ;;  %v329_v53 = vpop.xlane.xlu0 %328  ;;  %v3643_v62 = vsel %vm1677_vm15, %v1676_v44, %v1671_v57  ;;  %v711_v44 = vsel %vm272_vm0, %v162_v34, 0.0 }
  0xb5   :  { %v1050_v58 = vpack.c.bf16 %v332_v51, %v329_v53  ;;  %v1682_v63 = vrot.slane %v1328_v49, %v3481_v30  ;;  %v1686_v0 = vrot.slane %v1329_v50, %v3490_v38  ;;  %v146_v50 = vld [vmem:[%s4970_s0 + $0x410] sm:$0xff]  ;;  %v163_v51 = vld [vmem:[%s4970_s0 + $0x498] sm:$0xff] }
  0xb6   :  { %v663_v61 = vsel %vm272_vm0, %v146_v50, 0.0 }
  0xb7   :  { %v1330_v1 = vunpack.c.l.b16 %v1050_v58  ;;  %v1331_v5 = vunpack.c.h.b16 %v1050_v58  ;;  %547 = vadd.xlane.f32.xlu1 %v546_v54  ;;  %544 = vadd.xlane.f32.xlu0 %v543_v55  ;;  %v1687_v16 = vsel %vm1579_vm1, %v1686_v0, %v1682_v63  ;;  %v714_v63 = vsel %vm272_vm0, %v163_v51, 0.0 }
  0xb8   :  { %v338_v6 = vpop.xlane.xlu1 %337  ;;  %v335_v7 = vpop.xlane.xlu0 %334 }
  0xb9   :  { %v1691_v10 = vrot.slane %v1330_v1, %v3487_v36  ;;  %v1696_v11 = vrot.slane %v1331_v5, %v3499_v42  ;;  %v1051_v12 = vpack.c.bf16 %v338_v6, %v335_v7  ;;  %v224_v6 = vld [vmem:[%s4970_s0 + $0x680] sm:$0xff]  ;;  %v147_v7 = vld [vmem:[%s4970_s0 + $0x418] sm:$0xff] }
  0xba   :  { %v897_v15 = vsel %vm272_vm0, %v224_v6, 0.0 }
  0xbb   :  { %v1692_v17 = vsel %vm1586_vm2, %v1691_v10, %v1687_v16  ;;  %v1332_v18 = vunpack.c.l.b16 %v1051_v12  ;;  %v1333_v21 = vunpack.c.h.b16 %v1051_v12  ;;  %706 = vadd.xlane.f32.xlu1 %v705_v8  ;;  %550 = vadd.xlane.f32.xlu0 %v549_v9  ;;  %v666_v16 = vsel %vm272_vm0, %v147_v7, 0.0 }
  0xbc   :  { %v1697_v23 = vsel %vm1593_vm3, %v1696_v11, %v1692_v17  ;;  %v344_v24 = vpop.xlane.xlu1 %343  ;;  %v341_v25 = vpop.xlane.xlu0 %340 }
  0xbd   :  { %v1701_v31 = vrot.slane %v1332_v18, %v3510_v52  ;;  %v1706_v32 = vrot.slane %v1333_v21, %v3519_v60  ;;  %v1052_v33 = vpack.c.bf16 %v344_v24, %v341_v25  ;;  %v225_v24 = vld [vmem:[%s4970_s0 + $0x688] sm:$0xff] }
  0xbe   :  { %v900_v35 = vsel %vm272_vm0, %v225_v24, 0.0 }
  0xbf   :  { %v1702_v37 = vsel %vm1600_vm4, %v1701_v31, %v1697_v23  ;;  %v1334_v39 = vunpack.c.l.b16 %v1052_v33  ;;  %v1335_v20 = vunpack.c.h.b16 %v1052_v33  ;;  %658 = vadd.xlane.f32.xlu1 %v657_v26  ;;  %709 = vadd.xlane.f32.xlu0 %v708_v29  ;;  %v164_v23 = vld [vmem:[%s4970_s0 + $0x4a0] sm:$0xff] }
  0xc0   :  { %v1707_v40 = vsel %vm1607_vm5, %v1706_v32, %v1702_v37  ;;  %v350_v41 = vpop.xlane.xlu1 %349  ;;  %v347_v43 = vpop.xlane.xlu0 %346  ;;  %v717_v34 = vsel %vm272_vm0, %v164_v23, 0.0 }
  0xc1   :  { %v1711_v46 = vrot.slane %v1334_v39, %v3526_v2  ;;  %v1716_v47 = vrot.slane %v1335_v20, %v3539_v13  ;;  %v1053_v49 = vpack.c.bf16 %v350_v41, %v347_v43  ;;  %v165_v41 = vld [vmem:[%s4970_s0 + $0x4a8] sm:$0xff] }
  0xc3   :  { %v1712_v53 = vsel %vm1614_vm6, %v1711_v46, %v1707_v40  ;;  %v1336_v54 = vunpack.c.l.b16 %v1053_v49  ;;  %v1337_v55 = vunpack.c.h.b16 %v1053_v49  ;;  %712 = vadd.xlane.f32.xlu1 %v711_v44  ;;  %661 = vadd.xlane.f32.xlu0 %v660_v45  ;;  %v208_v40 = vld [vmem:[%s4970_s0 + $0x600] sm:$0xff]  ;;  %v720_v49 = vsel %vm272_vm0, %v165_v41, 0.0 }
  0xc4   :  { %v1717_v57 = vsel %vm4974_vm7, %v1716_v47, %v1712_v53  ;;  %v356_v58 = vpop.xlane.xlu1 %355  ;;  %v353_v59 = vpop.xlane.xlu0 %352  ;;  %v849_v47 = vsel %vm272_vm0, %v208_v40, 0.0 }
  0xc5   :  { %v1721_v0 = vrot.slane %v1336_v54, %v3545_v22  ;;  %v1726_v1 = vrot.slane %v1337_v55, %v3553_v27  ;;  %v1054_v5 = vpack.c.bf16 %v356_v58, %v353_v59  ;;  %v226_v55 = vld [vmem:[%s4970_s0 + $0x690] sm:$0xff] }
  0xc7   :  { %v1722_v8 = vsel %vm1628_vm8, %v1721_v0, %v1717_v57  ;;  %v1338_v9 = vunpack.c.l.b16 %v1054_v5  ;;  %v1339_v10 = vunpack.c.h.b16 %v1054_v5  ;;  %664 = vadd.xlane.f32.xlu1 %v663_v61  ;;  %715 = vadd.xlane.f32.xlu0 %v714_v63  ;;  %v209_v57 = vld [vmem:[%s4970_s0 + $0x608] sm:$0xff] }
  0xc8   :  { %v1727_v11 = vsel %vm1635_vm9, %v1726_v1, %v1722_v8  ;;  %v362_v12 = vpop.xlane.xlu1 %361  ;;  %v359_v14 = vpop.xlane.xlu0 %358  ;;  %v903_v1 = vsel %vm272_vm0, %v226_v55, 0.0  ;;  %v852_v5 = vsel %vm272_vm0, %v209_v57, 0.0  ;;  %v148_v8 = vld [vmem:[%s4970_s0 + $0x420] sm:$0xff] }
  0xc9   :  { %v1731_v17 = vrot.slane %v1338_v9, %v3571_v48  ;;  %v1736_v18 = vrot.slane %v1339_v10, %v3581_v56  ;;  %v1055_v21 = vpack.c.bf16 %v362_v12, %v359_v14  ;;  %v227_v9 = vld [vmem:[%s4970_s0 + $0x698] sm:$0xff] }
  0xcb   :  { %v1732_v25 = vsel %vm1642_vm10, %v1731_v17, %v1727_v11  ;;  %v1340_v26 = vunpack.c.l.b16 %v1055_v21  ;;  %v1341_v29 = vunpack.c.h.b16 %v1055_v21  ;;  %898 = vadd.xlane.f32.xlu1 %v897_v15  ;;  %667 = vadd.xlane.f32.xlu0 %v666_v16  ;;  %v906_v21 = vsel %vm272_vm0, %v227_v9, 0.0 }
  0xcc   :  { %v1737_v31 = vsel %vm1649_vm11, %v1736_v18, %v1732_v25  ;;  %v368_v32 = vpop.xlane.xlu1 %367  ;;  %v365_v33 = vpop.xlane.xlu0 %364  ;;  %v669_v18 = vsel %vm272_vm0, %v148_v8, 0.0 }
  0xcd   :  { %v1741_v37 = vrot.slane %v1340_v26, %v3588_v3  ;;  %v1746_v39 = vrot.slane %v1341_v29, %v3591_v4  ;;  %v1056_v20 = vpack.c.bf16 %v368_v32, %v365_v33  ;;  %v210_v26 = vld [vmem:[%s4970_s0 + $0x610] sm:$0xff]  ;;  %v149_v29 = vld [vmem:[%s4970_s0 + $0x428] sm:$0xff] }
  0xce   :  { %v672_v40 = vsel %vm272_vm0, %v149_v29, 0.0 }
  0xcf   :  { %v1342_v43 = vunpack.c.l.b16 %v1056_v20  ;;  %v1343_v44 = vunpack.c.h.b16 %v1056_v20  ;;  %718 = vadd.xlane.f32.xlu1 %v717_v34  ;;  %901 = vadd.xlane.f32.xlu0 %v900_v35  ;;  %v1742_v50 = vsel %vm1656_vm12, %v1741_v37, %v1737_v31  ;;  %v855_v20 = vsel %vm272_vm0, %v210_v26, 0.0 }
  0xd0   :  { %v374_v45 = vpop.xlane.xlu1 %373  ;;  %v371_v46 = vpop.xlane.xlu0 %370  ;;  %v1747_v58 = vsel %vm1663_vm13, %v1746_v39, %v1742_v50 }
  0xd1   :  { %v1751_v51 = vrot.slane %v1342_v43, %v3606_v19  ;;  %v1756_v53 = vrot.slane %v1343_v44, %v3613_v28  ;;  %v1057_v54 = vpack.c.bf16 %v374_v45, %v371_v46  ;;  %v166_v45 = vld [vmem:[%s4970_s0 + $0x4b0] sm:$0xff]  ;;  %v211_v46 = vld [vmem:[%s4970_s0 + $0x618] sm:$0xff] }
  0xd2   :  { %v723_v55 = vsel %vm272_vm0, %v166_v45, 0.0  ;;  %v858_v57 = vsel %vm272_vm0, %v211_v46, 0.0 }
  0xd3   :  { %v1344_v59 = vunpack.c.l.b16 %v1057_v54  ;;  %v1345_v61 = vunpack.c.h.b16 %v1057_v54  ;;  %850 = vadd.xlane.f32.xlu1 %v849_v47  ;;  %721 = vadd.xlane.f32.xlu0 %v720_v49  ;;  %v1752_v6 = vsel %vm1670_vm14, %v1751_v51, %v1747_v58 }
  0xd4   :  { %v380_v63 = vpop.xlane.xlu1 %379  ;;  %v377_v0 = vpop.xlane.xlu0 %376  ;;  %v3740_v10 = vsel %vm1677_vm15, %v1756_v53, %v1752_v6 }
  0xd5   :  { %v1058_v7 = vpack.c.bf16 %v380_v63, %v377_v0  ;;  %v1761_v11 = vrot.slane %v1344_v59, %v3481_v30  ;;  %v1765_v12 = vrot.slane %v1345_v61, %v3490_v38  ;;  %v228_v63 = vld [vmem:[%s4970_s0 + $0x6a0] sm:$0xff]  ;;  %v167_v0 = vld [vmem:[%s4970_s0 + $0x4b8] sm:$0xff] }
  0xd7   :  { %v1346_v14 = vunpack.c.l.b16 %v1058_v7  ;;  %v1347_v15 = vunpack.c.h.b16 %v1058_v7  ;;  %904 = vadd.xlane.f32.xlu1 %v903_v1  ;;  %853 = vadd.xlane.f32.xlu0 %v852_v5  ;;  %v1766_v31 = vsel %vm1579_vm1, %v1765_v12, %v1761_v11  ;;  %v909_v11 = vsel %vm272_vm0, %v228_v63, 0.0 }
  0xd8   :  { %v386_v16 = vpop.xlane.xlu1 %385  ;;  %v383_v17 = vpop.xlane.xlu0 %382  ;;  %v726_v12 = vsel %vm272_vm0, %v167_v0, 0.0 }
  0xd9   :  { %v1770_v23 = vrot.slane %v1346_v14, %v3487_v36  ;;  %v1775_v24 = vrot.slane %v1347_v15, %v3499_v42  ;;  %v1059_v25 = vpack.c.bf16 %v386_v16, %v383_v17  ;;  %v150_v17 = vld [vmem:[%s4970_s0 + $0x430] sm:$0xff] }
  0xdb   :  { %v1771_v32 = vsel %vm1586_vm2, %v1770_v23, %v1766_v31  ;;  %v1348_v33 = vunpack.c.l.b16 %v1059_v25  ;;  %v1349_v34 = vunpack.c.h.b16 %v1059_v25  ;;  %670 = vadd.xlane.f32.xlu1 %v669_v18  ;;  %907 = vadd.xlane.f32.xlu0 %v906_v21  ;;  %v229_v18 = vld [vmem:[%s4970_s0 + $0x6a8] sm:$0xff]  ;;  %v675_v31 = vsel %vm272_vm0, %v150_v17, 0.0 }
  0xdc   :  { %v1776_v35 = vsel %vm1593_vm3, %v1775_v24, %v1771_v32  ;;  %v392_v37 = vpop.xlane.xlu1 %391  ;;  %v389_v39 = vpop.xlane.xlu0 %388  ;;  %v912_v32 = vsel %vm272_vm0, %v229_v18, 0.0 }
  0xdd   :  { %v1780_v41 = vrot.slane %v1348_v33, %v3510_v52  ;;  %v1785_v43 = vrot.slane %v1349_v34, %v3519_v60  ;;  %v1060_v44 = vpack.c.bf16 %v392_v37, %v389_v39  ;;  %v212_v37 = vld [vmem:[%s4970_s0 + $0x620] sm:$0xff]  ;;  %v151_v39 = vld [vmem:[%s4970_s0 + $0x438] sm:$0xff] }
  0xde   :  { %v861_v46 = vsel %vm272_vm0, %v212_v37, 0.0 }
  0xdf   :  { %v1781_v47 = vsel %vm1600_vm4, %v1780_v41, %v1776_v35  ;;  %v1350_v49 = vunpack.c.l.b16 %v1060_v44  ;;  %v1351_v50 = vunpack.c.h.b16 %v1060_v44  ;;  %856 = vadd.xlane.f32.xlu1 %v855_v20  ;;  %673 = vadd.xlane.f32.xlu0 %v672_v40 }
  0xe0   :  { %v1786_v51 = vsel %vm1607_vm5, %v1785_v43, %v1781_v47  ;;  %v398_v53 = vpop.xlane.xlu1 %397  ;;  %v395_v54 = vpop.xlane.xlu0 %394  ;;  %v678_v47 = vsel %vm272_vm0, %v151_v39, 0.0 }
  0xe1   :  { %v1790_v58 = vrot.slane %v1350_v49, %v3526_v2  ;;  %v1795_v59 = vrot.slane %v1351_v50, %v3539_v13  ;;  %v1061_v61 = vpack.c.bf16 %v398_v53, %v395_v54  ;;  %v168_v53 = vld [vmem:[%s4970_s0 + $0x4c0] sm:$0xff]  ;;  %v213_v54 = vld [vmem:[%s4970_s0 + $0x628] sm:$0xff] }
  0xe2   :  { %v729_v0 = vsel %vm272_vm0, %v168_v53, 0.0 }
  0xe3   :  { %v1791_v1 = vsel %vm1614_vm6, %v1790_v58, %v1786_v51  ;;  %v1352_v5 = vunpack.c.l.b16 %v1061_v61  ;;  %v1353_v6 = vunpack.c.h.b16 %v1061_v61  ;;  %724 = vadd.xlane.f32.xlu1 %v723_v55  ;;  %859 = vadd.xlane.f32.xlu0 %v858_v57 }
  0xe4   :  { %v1796_v7 = vsel %vm4974_vm7, %v1795_v59, %v1791_v1  ;;  %v404_v8 = vpop.xlane.xlu1 %403  ;;  %v401_v9 = vpop.xlane.xlu0 %400  ;;  %v864_v1 = vsel %vm272_vm0, %v213_v54, 0.0 }
  0xe5   :  { %v1800_v14 = vrot.slane %v1352_v5, %v3545_v22  ;;  %v1805_v15 = vrot.slane %v1353_v6, %v3553_v27  ;;  %v1062_v16 = vpack.c.bf16 %v404_v8, %v401_v9  ;;  %v230_v8 = vld [vmem:[%s4970_s0 + $0x6b0] sm:$0xff]  ;;  %v169_v9 = vld [vmem:[%s4970_s0 + $0x4c8] sm:$0xff] }
  0xe6   :  { %v915_v17 = vsel %vm272_vm0, %v230_v8, 0.0  ;;  %v732_v18 = vsel %vm272_vm0, %v169_v9, 0.0 }
  0xe7   :  { %v1801_v21 = vsel %vm1628_vm8, %v1800_v14, %v1796_v7  ;;  %v1354_v23 = vunpack.c.l.b16 %v1062_v16  ;;  %v1355_v24 = vunpack.c.h.b16 %v1062_v16  ;;  %910 = vadd.xlane.f32.xlu1 %v909_v11  ;;  %727 = vadd.xlane.f32.xlu0 %v726_v12 }
  0xe8   :  { %v1806_v25 = vsel %vm1635_vm9, %v1805_v15, %v1801_v21  ;;  %v410_v26 = vpop.xlane.xlu1 %409  ;;  %v407_v29 = vpop.xlane.xlu0 %406 }
  0xe9   :  { %v1810_v33 = vrot.slane %v1354_v23, %v3571_v48  ;;  %v1815_v34 = vrot.slane %v1355_v24, %v3581_v56  ;;  %v1063_v35 = vpack.c.bf16 %v410_v26, %v407_v29  ;;  %v152_v24 = vld [vmem:[%s4970_s0 + $0x440] sm:$0xff] }
  0xeb   :  { %v1811_v20 = vsel %vm1642_vm10, %v1810_v33, %v1806_v25  ;;  %v1356_v40 = vunpack.c.l.b16 %v1063_v35  ;;  %v1357_v41 = vunpack.c.h.b16 %v1063_v35  ;;  %676 = vadd.xlane.f32.xlu1 %v675_v31  ;;  %913 = vadd.xlane.f32.xlu0 %v912_v32  ;;  %v231_v25 = vld [vmem:[%s4970_s0 + $0x6b8] sm:$0xff]  ;;  %v681_v35 = vsel %vm272_vm0, %v152_v24, 0.0 }
  0xec   :  { %v1816_v43 = vsel %vm1649_vm11, %v1815_v34, %v1811_v20  ;;  %v416_v44 = vpop.xlane.xlu1 %415  ;;  %v413_v45 = vpop.xlane.xlu0 %412  ;;  %v918_v37 = vsel %vm272_vm0, %v231_v25, 0.0 }
  0xed   :  { %v1820_v49 = vrot.slane %v1356_v40, %v3588_v3  ;;  %v1825_v50 = vrot.slane %v1357_v41, %v3591_v4  ;;  %v1064_v51 = vpack.c.bf16 %v416_v44, %v413_v45  ;;  %v214_v41 = vld [vmem:[%s4970_s0 + $0x630] sm:$0xff] }
  0xee   :  { %v867_v53 = vsel %vm272_vm0, %v214_v41, 0.0 }
  0xef   :  { %v1821_v55 = vsel %vm1656_vm12, %v1820_v49, %v1816_v43  ;;  %v1358_v57 = vunpack.c.l.b16 %v1064_v51  ;;  %v1359_v58 = vunpack.c.h.b16 %v1064_v51  ;;  %862 = vadd.xlane.f32.xlu1 %v861_v46  ;;  %679 = vadd.xlane.f32.xlu0 %v678_v47  ;;  %v153_v43 = vld [vmem:[%s4970_s0 + $0x448] sm:$0xff] }
  0xf0   :  { %v1826_v59 = vsel %vm1663_vm13, %v1825_v50, %v1821_v55  ;;  %v422_v61 = vpop.xlane.xlu1 %421  ;;  %v419_v63 = vpop.xlane.xlu0 %418  ;;  %v684_v54 = vsel %vm272_vm0, %v153_v43, 0.0 }
  0xf1   :  { %v1830_v5 = vrot.slane %v1358_v57, %v3606_v19  ;;  %v1835_v6 = vrot.slane %v1359_v58, %v3613_v28  ;;  %v1065_v7 = vpack.c.bf16 %v422_v61, %v419_v63  ;;  %v215_v61 = vld [vmem:[%s4970_s0 + $0x638] sm:$0xff] }
  0xf2   :  { %v870_v9 = vsel %vm272_vm0, %v215_v61, 0.0 }
  0xf3   :  { %v1831_v11 = vsel %vm1670_vm14, %v1830_v5, %v1826_v59  ;;  %v1360_v12 = vunpack.c.l.b16 %v1065_v7  ;;  %v1361_v14 = vunpack.c.h.b16 %v1065_v7  ;;  %730 = vadd.xlane.f32.xlu1 %v729_v0  ;;  %865 = vadd.xlane.f32.xlu0 %v864_v1  ;;  %v170_v59 = vld [vmem:[%s4970_s0 + $0x4d0] sm:$0xff] }
  0xf4   :  { %v428_v15 = vpop.xlane.xlu1 %427  ;;  %v425_v16 = vpop.xlane.xlu0 %424  ;;  %v3831_v21 = vsel %vm1677_vm15, %v1835_v6, %v1831_v11  ;;  %v735_v8 = vsel %vm272_vm0, %v170_v59, 0.0 }
  0xf5   :  { %v1066_v23 = vpack.c.bf16 %v428_v15, %v425_v16  ;;  %v1840_v26 = vrot.slane %v1360_v12, %v3481_v30  ;;  %v1844_v29 = vrot.slane %v1361_v14, %v3490_v38  ;;  %v232_v15 = vld [vmem:[%s4970_s0 + $0x6c0] sm:$0xff]  ;;  %v171_v16 = vld [vmem:[%s4970_s0 + $0x4d8] sm:$0xff] }
  0xf7   :  { %v1362_v31 = vunpack.c.l.b16 %v1066_v23  ;;  %v1363_v32 = vunpack.c.h.b16 %v1066_v23  ;;  %916 = vadd.xlane.f32.xlu1 %v915_v17  ;;  %733 = vadd.xlane.f32.xlu0 %v732_v18  ;;  %v1845_v44 = vsel %vm1579_vm1, %v1844_v29, %v1840_v26  ;;  %v921_v29 = vsel %vm272_vm0, %v232_v15, 0.0 }
  0xf8   :  { %v434_v33 = vpop.xlane.xlu1 %433  ;;  %v431_v34 = vpop.xlane.xlu0 %430 }
  0xf9   :  { %v1849_v39 = vrot.slane %v1362_v31, %v3487_v36  ;;  %v1854_v20 = vrot.slane %v1363_v32, %v3499_v42  ;;  %v1067_v40 = vpack.c.bf16 %v434_v33, %v431_v34  ;;  %v738_v31 = vsel %vm272_vm0, %v171_v16, 0.0 }
  0xfb   :  { %v1850_v45 = vsel %vm1586_vm2, %v1849_v39, %v1845_v44  ;;  %v1364_v46 = vunpack.c.l.b16 %v1067_v40  ;;  %v1365_v47 = vunpack.c.h.b16 %v1067_v40  ;;  %682 = vadd.xlane.f32.xlu1 %v681_v35  ;;  %919 = vadd.xlane.f32.xlu0 %v918_v37  ;;  %v154_v35 = vld [vmem:[%s4970_s0 + $0x450] sm:$0xff]  ;;  %v233_v37 = vld [vmem:[%s4970_s0 + $0x6c8] sm:$0xff] }
  0xfc   :  { %v1855_v49 = vsel %vm1593_vm3, %v1854_v20, %v1850_v45  ;;  %v440_v50 = vpop.xlane.xlu1 %439  ;;  %v437_v51 = vpop.xlane.xlu0 %436  ;;  %v687_v45 = vsel %vm272_vm0, %v154_v35, 0.0 }
  0xfd   :  { %v1859_v55 = vrot.slane %v1364_v46, %v3510_v52  ;;  %v1864_v57 = vrot.slane %v1365_v47, %v3519_v60  ;;  %v1068_v58 = vpack.c.bf16 %v440_v50, %v437_v51  ;;  %v924_v46 = vsel %vm272_vm0, %v233_v37, 0.0  ;;  %v216_v51 = vld [vmem:[%s4970_s0 + $0x640] sm:$0xff] }
  0xff   :  { %v1860_v63 = vsel %vm1600_vm4, %v1859_v55, %v1855_v49  ;;  %v1366_v0 = vunpack.c.l.b16 %v1068_v58  ;;  %v1367_v1 = vunpack.c.h.b16 %v1068_v58  ;;  %868 = vadd.xlane.f32.xlu1 %v867_v53  ;;  %685 = vadd.xlane.f32.xlu0 %v684_v54  ;;  %v155_v53 = vld [vmem:[%s4970_s0 + $0x458] sm:$0xff] }
 0x100   :  { %v1865_v5 = vsel %vm1607_vm5, %v1864_v57, %v1860_v63  ;;  %v446_v6 = vpop.xlane.xlu1 %445  ;;  %v443_v7 = vpop.xlane.xlu0 %442  ;;  %v873_v63 = vsel %vm272_vm0, %v216_v51, 0.0 }
 0x101   :  { %v1869_v11 = vrot.slane %v1366_v0, %v3526_v2  ;;  %v1874_v12 = vrot.slane %v1367_v1, %v3539_v13  ;;  %v1069_v14 = vpack.c.bf16 %v446_v6, %v443_v7  ;;  %v690_v0 = vsel %vm272_vm0, %v155_v53, 0.0  ;;  %v172_v7 = vld [vmem:[%s4970_s0 + $0x4e0] sm:$0xff] }
 0x103   :  { %v1870_v17 = vsel %vm1614_vm6, %v1869_v11, %v1865_v5  ;;  %v1368_v18 = vunpack.c.l.b16 %v1069_v14  ;;  %v1369_v23 = vunpack.c.h.b16 %v1069_v14  ;;  %736 = vadd.xlane.f32.xlu1 %v735_v8  ;;  %871 = vadd.xlane.f32.xlu0 %v870_v9  ;;  %v217_v8 = vld [vmem:[%s4970_s0 + $0x648] sm:$0xff] }
 0x104   :  { %v1875_v24 = vsel %vm4974_vm7, %v1874_v12, %v1870_v17  ;;  %v452_v25 = vpop.xlane.xlu1 %451  ;;  %v449_v26 = vpop.xlane.xlu0 %448  ;;  %v741_v17 = vsel %vm272_vm0, %v172_v7, 0.0 }
 0x105   :  { %v1879_v32 = vrot.slane %v1368_v18, %v3545_v22  ;;  %v1884_v33 = vrot.slane %v1369_v23, %v3553_v27  ;;  %v1070_v34 = vpack.c.bf16 %v452_v25, %v449_v26  ;;  %v876_v18 = vsel %vm272_vm0, %v217_v8, 0.0  ;;  %v234_v26 = vld [vmem:[%s4970_s0 + $0x6d0] sm:$0xff] }
 0x106   :  { %v927_v35 = vsel %vm272_vm0, %v234_v26, 0.0 }
 0x107   :  { %v1880_v39 = vsel %vm1628_vm8, %v1879_v32, %v1875_v24  ;;  %v1370_v20 = vunpack.c.l.b16 %v1070_v34  ;;  %v1371_v40 = vunpack.c.h.b16 %v1070_v34  ;;  %922 = vadd.xlane.f32.xlu1 %v921_v29  ;;  %739 = vadd.xlane.f32.xlu0 %v738_v31  ;;  %v173_v29 = vld [vmem:[%s4970_s0 + $0x4e8] sm:$0xff] }
 0x108   :  { %v1885_v41 = vsel %vm1635_vm9, %v1884_v33, %v1880_v39  ;;  %v458_v43 = vpop.xlane.xlu1 %457  ;;  %v455_v44 = vpop.xlane.xlu0 %454  ;;  %v744_v37 = vsel %vm272_vm0, %v173_v29, 0.0 }
 0x109   :  { %v1889_v47 = vrot.slane %v1370_v20, %v3571_v48  ;;  %v1894_v49 = vrot.slane %v1371_v40, %v3581_v56  ;;  %v1071_v50 = vpack.c.bf16 %v458_v43, %v455_v44  ;;  %v156_v40 = vld [vmem:[%s4970_s0 + $0x460] sm:$0xff] }
 0x10a   :  { %v693_v51 = vsel %vm272_vm0, %v156_v40, 0.0 }
 0x10b   :  { %v1890_v54 = vsel %vm1642_vm10, %v1889_v47, %v1885_v41  ;;  %v1372_v55 = vunpack.c.l.b16 %v1071_v50  ;;  %v1373_v57 = vunpack.c.h.b16 %v1071_v50  ;;  %688 = vadd.xlane.f32.xlu1 %v687_v45  ;;  %925 = vadd.xlane.f32.xlu0 %v924_v46  ;;  %v235_v41 = vld [vmem:[%s4970_s0 + $0x6d8] sm:$0xff] }
 0x10c   :  { %v1895_v58 = vsel %vm1649_vm11, %v1894_v49, %v1890_v54  ;;  %v464_v59 = vpop.xlane.xlu1 %463  ;;  %v461_v61 = vpop.xlane.xlu0 %460  ;;  %v930_v53 = vsel %vm272_vm0, %v235_v41, 0.0 }
 0x10d   :  { %v1899_v1 = vrot.slane %v1372_v55, %v3588_v3  ;;  %v1904_v5 = vrot.slane %v1373_v57, %v3591_v4  ;;  %v1072_v6 = vpack.c.bf16 %v464_v59, %v461_v61  ;;  %v157_v59 = vld [vmem:[%s4970_s0 + $0x468] sm:$0xff] }
 0x10f   :  { %v1900_v9 = vsel %vm1656_vm12, %v1899_v1, %v1895_v58  ;;  %v1374_v11 = vunpack.c.l.b16 %v1072_v6  ;;  %v1375_v12 = vunpack.c.h.b16 %v1072_v6  ;;  %874 = vadd.xlane.f32.xlu1 %v873_v63  ;;  %691 = vadd.xlane.f32.xlu0 %v690_v0  ;;  %v192_v58 = vld [vmem:[%s4970_s0 + $0x580] sm:$0xff] }
 0x110   :  { %v1905_v14 = vsel %vm1663_vm13, %v1904_v5, %v1900_v9  ;;  %v470_v15 = vpop.xlane.xlu1 %469  ;;  %v467_v16 = vpop.xlane.xlu0 %466  ;;  %v801_v8 = vsel %vm272_vm0, %v192_v58, 0.0  ;;  %v696_v9 = vsel %vm272_vm0, %v157_v59, 0.0 }
 0x111   :  { %v1909_v23 = vrot.slane %v1374_v11, %v3606_v19  ;;  %v1914_v24 = vrot.slane %v1375_v12, %v3613_v28  ;;  %v1073_v25 = vpack.c.bf16 %v470_v15, %v467_v16  ;;  %v218_v15 = vld [vmem:[%s4970_s0 + $0x650] sm:$0xff]  ;;  %v193_v16 = vld [vmem:[%s4970_s0 + $0x588] sm:$0xff] }
 0x112   :  { %v879_v29 = vsel %vm272_vm0, %v218_v15, 0.0 }
 0x113   :  { %v1376_v31 = vunpack.c.l.b16 %v1073_v25  ;;  %v1377_v32 = vunpack.c.h.b16 %v1073_v25  ;;  %742 = vadd.xlane.f32.xlu1 %v741_v17  ;;  %877 = vadd.xlane.f32.xlu0 %v876_v18  ;;  %v1910_v39 = vsel %vm1670_vm14, %v1909_v23, %v1905_v14 }
 0x114   :  { %v476_v33 = vpop.xlane.xlu1 %475  ;;  %v473_v34 = vpop.xlane.xlu0 %472  ;;  %v3934_v43 = vsel %vm1677_vm15, %v1914_v24, %v1910_v39 }
 0x115   :  { %v1074_v20 = vpack.c.bf16 %v476_v33, %v473_v34  ;;  %v1919_v44 = vrot.slane %v1376_v31, %v3481_v30  ;;  %v1923_v45 = vrot.slane %v1377_v32, %v3490_v38  ;;  %v804_v31 = vsel %vm272_vm0, %v193_v16, 0.0 }
 0x117   :  { %v1378_v46 = vunpack.c.l.b16 %v1074_v20  ;;  %v1379_v47 = vunpack.c.h.b16 %v1074_v20  ;;  %928 = vadd.xlane.f32.xlu1 %v927_v35  ;;  %745 = vadd.xlane.f32.xlu0 %v744_v37  ;;  %v1924_v61 = vsel %vm1579_vm1, %v1923_v45, %v1919_v44  ;;  %v109_v35 = vld [vmem:[%s4970_s0 + $0x2e8] sm:$0xff]  ;;  %v219_v37 = vld [vmem:[%s4970_s0 + $0x658] sm:$0xff] }
 0x118   :  { %v482_v49 = vpop.xlane.xlu1 %481  ;;  %v479_v50 = vpop.xlane.xlu0 %478 }
 0x119   :  { %v1928_v54 = vrot.slane %v1378_v46, %v3487_v36  ;;  %v1933_v55 = vrot.slane %v1379_v47, %v3499_v42  ;;  %v1075_v57 = vpack.c.bf16 %v482_v49, %v479_v50  ;;  %v552_v46 = vsel %vm272_vm0, %v109_v35, 0.0 }
 0x11a   :  { %v882_v47 = vsel %vm272_vm0, %v219_v37, 0.0 }
 0x11b   :  { %v1929_v63 = vsel %vm1586_vm2, %v1928_v54, %v1924_v61  ;;  %v1380_v0 = vunpack.c.l.b16 %v1075_v57  ;;  %v1381_v1 = vunpack.c.h.b16 %v1075_v57  ;;  %694 = vadd.xlane.f32.xlu1 %v693_v51  ;;  %931 = vadd.xlane.f32.xlu0 %v930_v53  ;;  %v175_v53 = vld [vmem:[%s4970_s0 + $0x4f8] sm:$0xff]  ;;  %v174_v54 = vld [vmem:[%s4970_s0 + $0x4f0] sm:$0xff] }
 0x11c   :  { %v1934_v5 = vsel %vm1593_vm3, %v1933_v55, %v1929_v63  ;;  %v488_v6 = vpop.xlane.xlu1 %487  ;;  %v485_v7 = vpop.xlane.xlu0 %484 }
 0x11d   :  { %v1938_v11 = vrot.slane %v1380_v0, %v3510_v52  ;;  %v1943_v12 = vrot.slane %v1381_v1, %v3519_v60  ;;  %v1076_v14 = vpack.c.bf16 %v488_v6, %v485_v7  ;;  %v750_v0 = vsel %vm272_vm0, %v175_v53, 0.0 }
 0x11e   :  { %v747_v1 = vsel %vm272_vm0, %v174_v54, 0.0 }
 0x11f   :  { %v1939_v17 = vsel %vm1600_vm4, %v1938_v11, %v1934_v5  ;;  %v1382_v18 = vunpack.c.l.b16 %v1076_v14  ;;  %v1383_v23 = vunpack.c.h.b16 %v1076_v14  ;;  %802 = vadd.xlane.f32.xlu1 %v801_v8  ;;  %697 = vadd.xlane.f32.xlu0 %v696_v9  ;;  %v177_v8 = vld [vmem:[%s4970_s0 + $0x508] sm:$0xff]  ;;  %v176_v9 = vld [vmem:[%s4970_s0 + $0x500] sm:$0xff] }
 0x120   :  { %v1944_v24 = vsel %vm1607_vm5, %v1943_v12, %v1939_v17  ;;  %v494_v25 = vpop.xlane.xlu1 %493  ;;  %v491_v26 = vpop.xlane.xlu0 %490 }
 0x121   :  { %v1948_v32 = vrot.slane %v1382_v18, %v3526_v2  ;;  %v1953_v33 = vrot.slane %v1383_v23, %v3539_v13  ;;  %v1077_v34 = vpack.c.bf16 %v494_v25, %v491_v26  ;;  %v756_v18 = vsel %vm272_vm0, %v177_v8, 0.0 }
 0x122   :  { %v753_v23 = vsel %vm272_vm0, %v176_v9, 0.0 }
 0x123   :  { %v1949_v39 = vsel %vm1614_vm6, %v1948_v32, %v1944_v24  ;;  %v1384_v20 = vunpack.c.l.b16 %v1077_v34  ;;  %v1385_v40 = vunpack.c.h.b16 %v1077_v34  ;;  %880 = vadd.xlane.f32.xlu1 %v879_v29  ;;  %805 = vadd.xlane.f32.xlu0 %v804_v31  ;;  %v195_v29 = vld [vmem:[%s4970_s0 + $0x598] sm:$0xff]  ;;  %v194_v31 = vld [vmem:[%s4970_s0 + $0x590] sm:$0xff] }
 0x124   :  { %v1954_v41 = vsel %vm4974_vm7, %v1953_v33, %v1949_v39  ;;  %v500_v44 = vpop.xlane.xlu1 %499  ;;  %v497_v45 = vpop.xlane.xlu0 %496 }
 0x125   :  { %v1958_v49 = vrot.slane %v1384_v20, %v3545_v22  ;;  %v1963_v50 = vrot.slane %v1385_v40, %v3553_v27  ;;  %v1078_v51 = vpack.c.bf16 %v500_v44, %v497_v45  ;;  %v810_v20 = vsel %vm272_vm0, %v195_v29, 0.0 }
 0x126   :  { %v807_v40 = vsel %vm272_vm0, %v194_v31, 0.0 }
 0x127   :  { %v1959_v55 = vsel %vm1628_vm8, %v1958_v49, %v1954_v41  ;;  %v1386_v57 = vunpack.c.l.b16 %v1078_v51  ;;  %v1387_v58 = vunpack.c.h.b16 %v1078_v51  ;;  %553 = vadd.xlane.f32.xlu1 %v552_v46  ;;  %883 = vadd.xlane.f32.xlu0 %v882_v47  ;;  %v237_v46 = vld [vmem:[%s4970_s0 + $0x6e8] sm:$0xff]  ;;  %v236_v47 = vld [vmem:[%s4970_s0 + $0x6e0] sm:$0xff] }
 0x128   :  { %v1964_v59 = vsel %vm1635_vm9, %v1963_v50, %v1959_v55  ;;  %v506_v61 = vpop.xlane.xlu1 %505  ;;  %v503_v63 = vpop.xlane.xlu0 %502  ;;  %v936_v54 = vsel %vm272_vm0, %v237_v46, 0.0  ;;  %v933_v55 = vsel %vm272_vm0, %v236_v47, 0.0 }
 0x129   :  { %v1968_v5 = vrot.slane %v1386_v57, %v3571_v48  ;;  %v1973_v6 = vrot.slane %v1387_v58, %v3581_v56  ;;  %v1079_v7 = vpack.c.bf16 %v506_v61, %v503_v63  ;;  %v128_v61 = vld [vmem:[%s4970_s0 + $0x380] sm:$0xff] }
 0x12b   :  { %v1969_v11 = vsel %vm1642_vm10, %v1968_v5, %v1964_v59  ;;  %v1388_v12 = vunpack.c.l.b16 %v1079_v7  ;;  %v1389_v14 = vunpack.c.h.b16 %v1079_v7  ;;  %751 = vadd.xlane.f32.xlu1 %v750_v0  ;;  %748 = vadd.xlane.f32.xlu0 %v747_v1  ;;  %v129_v59 = vld [vmem:[%s4970_s0 + $0x388] sm:$0xff] }
 0x12c   :  { %v1974_v15 = vsel %vm1649_vm11, %v1973_v6, %v1969_v11  ;;  %v512_v16 = vpop.xlane.xlu1 %511  ;;  %v509_v17 = vpop.xlane.xlu0 %508  ;;  %v612_v9 = vsel %vm272_vm0, %v129_v59, 0.0  ;;  %v609_v11 = vsel %vm272_vm0, %v128_v61, 0.0 }
 0x12d   :  { %v1978_v24 = vrot.slane %v1388_v12, %v3588_v3  ;;  %v1983_v25 = vrot.slane %v1389_v14, %v3591_v4  ;;  %v1080_v26 = vpack.c.bf16 %v512_v16, %v509_v17  ;;  %v159_v16 = vld [vmem:[%s4970_s0 + $0x478] sm:$0xff]  ;;  %v158_v17 = vld [vmem:[%s4970_s0 + $0x470] sm:$0xff] }
 0x12f   :  { %v1979_v32 = vsel %vm1656_vm12, %v1978_v24, %v1974_v15  ;;  %v1390_v33 = vunpack.c.l.b16 %v1080_v26  ;;  %v1391_v34 = vunpack.c.h.b16 %v1080_v26  ;;  %757 = vadd.xlane.f32.xlu1 %v756_v18  ;;  %754 = vadd.xlane.f32.xlu0 %v753_v23 }
 0x130   :  { %v1984_v35 = vsel %vm1663_vm13, %v1983_v25, %v1979_v32  ;;  %v518_v37 = vpop.xlane.xlu1 %517  ;;  %v515_v39 = vpop.xlane.xlu0 %514  ;;  %v702_v32 = vsel %vm272_vm0, %v159_v16, 0.0 }
 0x131   :  { %v1988_v41 = vrot.slane %v1390_v33, %v3606_v19  ;;  %v1993_v44 = vrot.slane %v1391_v34, %v3613_v28  ;;  %v1081_v45 = vpack.c.bf16 %v518_v37, %v515_v39  ;;  %v699_v33 = vsel %vm272_vm0, %v158_v17, 0.0  ;;  %v179_v39 = vld [vmem:[%s4970_s0 + $0x518] sm:$0xff] }
 0x133   :  { %v1392_v49 = vunpack.c.l.b16 %v1081_v45  ;;  %v1393_v50 = vunpack.c.h.b16 %v1081_v45  ;;  %811 = vadd.xlane.f32.xlu1 %v810_v20  ;;  %808 = vadd.xlane.f32.xlu0 %v807_v40  ;;  %v1989_v57 = vsel %vm1670_vm14, %v1988_v41, %v1984_v35  ;;  %v178_v20 = vld [vmem:[%s4970_s0 + $0x510] sm:$0xff] }
 0x134   :  { %v524_v51 = vpop.xlane.xlu1 %523  ;;  %v521_v53 = vpop.xlane.xlu0 %520  ;;  %v4031_v63 = vsel %vm1677_vm15, %v1993_v44, %v1989_v57  ;;  %v220_v57 = vld [vmem:[%s4970_s0 + $0x660] sm:$0xff] }
 0x135   :  { %v1082_v58 = vpack.c.bf16 %v524_v51, %v521_v53  ;;  %v1998_v0 = vrot.slane %v1392_v49, %v3481_v30  ;;  %v2002_v1 = vrot.slane %v1393_v50, %v3490_v38  ;;  %v762_v49 = vsel %vm272_vm0, %v179_v39, 0.0 }
 0x136   :  { %v759_v50 = vsel %vm272_vm0, %v178_v20, 0.0 }
 0x137   :  { %v1394_v5 = vunpack.c.l.b16 %v1082_v58  ;;  %v1395_v6 = vunpack.c.h.b16 %v1082_v58  ;;  %937 = vadd.xlane.f32.xlu1 %v936_v54  ;;  %934 = vadd.xlane.f32.xlu0 %v933_v55  ;;  %v2003_v18 = vsel %vm1579_vm1, %v2002_v1, %v1998_v0  ;;  %v221_v55 = vld [vmem:[%s4970_s0 + $0x668] sm:$0xff] }
 0x138   :  { %v530_v7 = vpop.xlane.xlu1 %529  ;;  %v527_v8 = vpop.xlane.xlu0 %526 }
 0x139   :  { %v2007_v12 = vrot.slane %v1394_v5, %v3487_v36  ;;  %v2012_v14 = vrot.slane %v1395_v6, %v3499_v42  ;;  %v1083_v15 = vpack.c.bf16 %v530_v7, %v527_v8  ;;  %v888_v6 = vsel %vm272_vm0, %v221_v55, 0.0 }
 0x13a   :  { %v885_v7 = vsel %vm272_vm0, %v220_v57, 0.0 }
 0x13b   :  { %v2008_v23 = vsel %vm1586_vm2, %v2007_v12, %v2003_v18  ;;  %v1396_v24 = vunpack.c.l.b16 %v1083_v15  ;;  %v1397_v25 = vunpack.c.h.b16 %v1083_v15  ;;  %613 = vadd.xlane.f32.xlu1 %v612_v9  ;;  %610 = vadd.xlane.f32.xlu0 %v609_v11  ;;  %v257_v12 = vld [vmem:[%s4970_s0 + $0x788] sm:$0xff] }
 0x13c   :  { %v2013_v26 = vsel %vm1593_vm3, %v2012_v14, %v2008_v23  ;;  %v536_v29 = vpop.xlane.xlu1 %535  ;;  %v533_v31 = vpop.xlane.xlu0 %532  ;;  %v256_v14 = vld [vmem:[%s4970_s0 + $0x780] sm:$0xff] }
 0x13d   :  { %v2017_v34 = vrot.slane %v1396_v24, %v3510_v52  ;;  %v2022_v35 = vrot.slane %v1397_v25, %v3519_v60  ;;  %v1084_v37 = vpack.c.bf16 %v536_v29, %v533_v31  ;;  %v996_v25 = vsel %vm272_vm0, %v257_v12, 0.0 }
 0x13f   :  { %v2018_v40 = vsel %vm1600_vm4, %v2017_v34, %v2013_v26  ;;  %v1398_v41 = vunpack.c.l.b16 %v1084_v37  ;;  %v1399_v44 = vunpack.c.h.b16 %v1084_v37  ;;  %703 = vadd.xlane.f32.xlu1 %v702_v32  ;;  %700 = vadd.xlane.f32.xlu0 %v699_v33  ;;  %v993_v26 = vsel %vm272_vm0, %v256_v14, 0.0  ;;  %v111_v32 = vld [vmem:[%s4970_s0 + $0x2f8] sm:$0xff]  ;;  %v110_v33 = vld [vmem:[%s4970_s0 + $0x2f0] sm:$0xff] }
 0x140   :  { %v2023_v45 = vsel %vm1607_vm5, %v2022_v35, %v2018_v40  ;;  %v542_v46 = vpop.xlane.xlu1 %541  ;;  %v539_v47 = vpop.xlane.xlu0 %538  ;;  %v558_v20 = vsel %vm272_vm0, %v111_v32, 0.0  ;;  %v555_v40 = vsel %vm272_vm0, %v110_v33, 0.0 }
 0x141   :  { %v2027_v51 = vrot.slane %v1398_v41, %v3526_v2  ;;  %v2032_v53 = vrot.slane %v1399_v44, %v3539_v13  ;;  %v1085_v54 = vpack.c.bf16 %v542_v46, %v539_v47  ;;  %v113_v44 = vld [vmem:[%s4970_s0 + $0x308] sm:$0xff]  ;;  %v1169_v46 = vld [vmem:[%s4971_s1] sm:$0xff] }
 0x142   :  { %v1173_v47 = vld [vmem:[%s4971_s1 + $0x20] sm:$0xff] }
 0x143   :  { %v2028_v58 = vsel %vm1614_vm6, %v2027_v51, %v2023_v45  ;;  %v1400_v59 = vunpack.c.l.b16 %v1085_v54  ;;  %v1401_v61 = vunpack.c.h.b16 %v1085_v54  ;;  %763 = vadd.xlane.f32.xlu1 %v762_v49  ;;  %760 = vadd.xlane.f32.xlu0 %v759_v50  ;;  %v112_v45 = vld [vmem:[%s4970_s0 + $0x300] sm:$0xff]  ;;  %v564_v51 = vsel %vm272_vm0, %v113_v44, 0.0 }
 0x144   :  { %v2033_v0 = vsel %vm4974_vm7, %v2032_v53, %v2028_v58  ;;  %v548_v1 = vpop.xlane.xlu1 %547  ;;  %v545_v5 = vpop.xlane.xlu0 %544  ;;  %v561_v53 = vsel %vm272_vm0, %v112_v45, 0.0  ;;  %v3107_v54 = vcombine.high %v1169_v46, %v1173_v47  ;;  %v3106_v55 = vcombine.low %v1169_v46, %v1173_v47  ;;  %v131_v58 = vld [vmem:[%s4970_s0 + $0x398] sm:$0xff] }
 0x145   :  { %v2037_v8 = vrot.slane %v1400_v59, %v3545_v22  ;;  %v2042_v9 = vrot.slane %v1401_v61, %v3553_v27  ;;  %v1086_v11 = vpack.c.bf16 %v548_v1, %v545_v5  ;;  %v130_v59 = vld [vmem:[%s4970_s0 + $0x390] sm:$0xff] }
 0x146   :  { %2929 = vmatprep.subr.bf16.mxu1 %v3107_v54 }
 0x147   :  { %v2038_v15 = vsel %vm1628_vm8, %v2037_v8, %v2033_v0  ;;  %v1402_v16 = vunpack.c.l.b16 %v1086_v11  ;;  %v1403_v17 = vunpack.c.h.b16 %v1086_v11  ;;  %889 = vadd.xlane.f32.xlu1 %v888_v6  ;;  %886 = vadd.xlane.f32.xlu0 %v885_v7  ;;  %v618_v6 = vsel %vm272_vm0, %v131_v58, 0.0  ;;  %v196_v11 = vld [vmem:[%s4970_s0 + $0x5a0] sm:$0xff] }
 0x148   :  { %v2043_v18 = vsel %vm1635_vm9, %v2042_v9, %v2038_v15  ;;  %v707_v23 = vpop.xlane.xlu1 %706  ;;  %v4084_v24 = vpop.xlane.xlu0 %550  ;;  %v615_v7 = vsel %vm272_vm0, %v130_v59, 0.0  ;;  %2930 = vmatpush1.bf16.xpose.msra.mxu1 %v3106_v55  ;;  %v197_v9 = vld [vmem:[%s4970_s0 + $0x5a8] sm:$0xff]  ;;  %v240_v58 = vld [vmem:[%s4970_s0 + $0x700] sm:$0xff] }
 0x149   :  { %v2047_v29 = vrot.slane %v1402_v16, %v3571_v48  ;;  %v2052_v31 = vrot.slane %v1403_v17, %v3581_v56 }
 0x14b   :  { %v2048_v34 = vsel %vm1642_vm10, %v2047_v29, %v2043_v18  ;;  %997 = vadd.xlane.f32.xlu1 %v996_v25  ;;  %994 = vadd.xlane.f32.xlu0 %v993_v26  ;;  %v816_v26 = vsel %vm272_vm0, %v197_v9, 0.0  ;;  %v813_v29 = vsel %vm272_vm0, %v196_v11, 0.0  ;;  %v259_v9 = vld [vmem:[%s4970_s0 + $0x798] sm:$0xff]  ;;  %v258_v11 = vld [vmem:[%s4970_s0 + $0x790] sm:$0xff] }
 0x14c   :  { %v4098_v35 = vsel %vm1649_vm11, %v2052_v31, %v2048_v34  ;;  %v659_v37 = vpop.xlane.xlu1 %658  ;;  %v710_v39 = vpop.xlane.xlu0 %709  ;;  %v239_v34 = vld [vmem:[%s4970_s0 + $0x6f8] sm:$0xff] }
 0x14d   :  { %v1113_v41 = vpack.c.bf16 %v710_v39, %v707_v23 }
 0x14f   :  { %559 = vadd.xlane.f32.xlu1 %v558_v20  ;;  %556 = vadd.xlane.f32.xlu0 %v555_v40  ;;  %v1456_v61 = vunpack.c.l.b16 %v1113_v41  ;;  %v1457_v0 = vunpack.c.h.b16 %v1113_v41 }
 0x150   :  { %v713_v49 = vpop.xlane.xlu1 %712  ;;  %v662_v50 = vpop.xlane.xlu0 %661 }
 0x151   :  { %v1105_v57 = vpack.c.bf16 %v662_v50, %v659_v37  ;;  %v2314_v12 = vrot.slane %v1456_v61, %v3481_v30  ;;  %v2318_v14 = vrot.slane %v1457_v0, %v3490_v38  ;;  %v238_v37 = vld [vmem:[%s4970_s0 + $0x6f0] sm:$0xff]  ;;  %v942_v50 = vsel %vm272_vm0, %v239_v34, 0.0 }
 0x153   :  { %565 = vadd.xlane.f32.xlu1 %v564_v51  ;;  %562 = vadd.xlane.f32.xlu0 %v561_v53  ;;  %v1440_v15 = vunpack.c.l.b16 %v1105_v57  ;;  %v1441_v16 = vunpack.c.h.b16 %v1105_v57  ;;  %v2319_v39 = vsel %vm1579_vm1, %v2318_v14, %v2314_v12  ;;  %v939_v51 = vsel %vm272_vm0, %v238_v37, 0.0  ;;  %v241_v57 = vld [vmem:[%s4970_s0 + $0x708] sm:$0xff] }
 0x154   :  { %v665_v1 = vpop.xlane.xlu1 %664  ;;  %v716_v5 = vpop.xlane.xlu0 %715 }
 0x155   :  { %v1114_v8 = vpack.c.bf16 %v716_v5, %v713_v49  ;;  %v2235_v20 = vrot.slane %v1440_v15, %v3481_v30  ;;  %v2239_v40 = vrot.slane %v1441_v16, %v3490_v38 }
 0x157   :  { %v1458_v17 = vunpack.c.l.b16 %v1114_v8  ;;  %v1459_v18 = vunpack.c.h.b16 %v1114_v8  ;;  %619 = vadd.xlane.f32.xlu1 %v618_v6  ;;  %616 = vadd.xlane.f32.xlu0 %v615_v7  ;;  %v2240_v59 = vsel %vm1579_vm1, %v2239_v40, %v2235_v20  ;;  %v948_v6 = vsel %vm272_vm0, %v241_v57, 0.0 }
 0x158   :  { %v899_v23 = vpop.xlane.xlu1 %898  ;;  %v668_v25 = vpop.xlane.xlu0 %667  ;;  %v945_v7 = vsel %vm272_vm0, %v240_v58, 0.0 }
 0x159   :  { %v2323_v31 = vrot.slane %v1458_v17, %v3487_v36  ;;  %v2328_v32 = vrot.slane %v1459_v18, %v3499_v42  ;;  %v1106_v33 = vpack.c.bf16 %v668_v25, %v665_v1  ;;  %v1002_v17 = vsel %vm272_vm0, %v259_v9, 0.0 }
 0x15a   :  { %v999_v18 = vsel %vm272_vm0, %v258_v11, 0.0 }
 0x15b   :  { %v2324_v41 = vsel %vm1586_vm2, %v2323_v31, %v2319_v39  ;;  %v1442_v44 = vunpack.c.l.b16 %v1106_v33  ;;  %v1443_v45 = vunpack.c.h.b16 %v1106_v33  ;;  %817 = vadd.xlane.f32.xlu1 %v816_v26  ;;  %814 = vadd.xlane.f32.xlu0 %v813_v29  ;;  %v115_v29 = vld [vmem:[%s4970_s0 + $0x318] sm:$0xff]  ;;  %v114_v31 = vld [vmem:[%s4970_s0 + $0x310] sm:$0xff] }
 0x15c   :  { %v2329_v46 = vsel %vm1593_vm3, %v2328_v32, %v2324_v41  ;;  %v719_v47 = vpop.xlane.xlu1 %718  ;;  %v902_v49 = vpop.xlane.xlu0 %901  ;;  %v570_v40 = vsel %vm272_vm0, %v115_v29, 0.0  ;;  %v567_v41 = vsel %vm272_vm0, %v114_v31, 0.0  ;;  %v242_v31 = vld [vmem:[%s4970_s0 + $0x710] sm:$0xff] }
 0x15d   :  { %v2244_v53 = vrot.slane %v1442_v44, %v3487_v36  ;;  %v2249_v54 = vrot.slane %v1443_v45, %v3499_v42  ;;  %v1145_v55 = vpack.c.bf16 %v902_v49, %v899_v23  ;;  %v181_v45 = vld [vmem:[%s4970_s0 + $0x528] sm:$0xff] }
 0x15f   :  { %v2245_v61 = vsel %vm1586_vm2, %v2244_v53, %v2240_v59  ;;  %943 = vadd.xlane.f32.xlu1 %v942_v50  ;;  %940 = vadd.xlane.f32.xlu0 %v939_v51  ;;  %v1520_v32 = vunpack.c.l.b16 %v1145_v55  ;;  %v1521_v33 = vunpack.c.h.b16 %v1145_v55  ;;  %v768_v55 = vsel %vm272_vm0, %v181_v45, 0.0 }
 0x160   :  { %v4160_v0 = vsel %vm1593_vm3, %v2249_v54, %v2245_v61  ;;  %v851_v1 = vpop.xlane.xlu1 %850  ;;  %v722_v5 = vpop.xlane.xlu0 %721 }
 0x161   :  { %v1115_v8 = vpack.c.bf16 %v722_v5, %v719_v47  ;;  %v2630_v47 = vrot.slane %v1520_v32, %v3481_v30  ;;  %v2634_v49 = vrot.slane %v1521_v33, %v3490_v38  ;;  %v222_v5 = vld [vmem:[%s4970_s0 + $0x670] sm:$0xff] }
 0x163   :  { %v1460_v12 = vunpack.c.l.b16 %v1115_v8  ;;  %v1461_v14 = vunpack.c.h.b16 %v1115_v8  ;;  %949 = vadd.xlane.f32.xlu1 %v948_v6  ;;  %946 = vadd.xlane.f32.xlu0 %v945_v7  ;;  %v2635_v6 = vsel %vm1579_vm1, %v2634_v49, %v2630_v47 }
 0x164   :  { %v905_v15 = vpop.xlane.xlu1 %904  ;;  %v854_v16 = vpop.xlane.xlu0 %853 }
 0x165   :  { %v2333_v23 = vrot.slane %v1460_v12, %v3510_v52  ;;  %v2338_v25 = vrot.slane %v1461_v14, %v3519_v60  ;;  %v1137_v26 = vpack.c.bf16 %v854_v16, %v851_v1  ;;  %v223_v1 = vld [vmem:[%s4970_s0 + $0x678] sm:$0xff] }
 0x167   :  { %v2334_v34 = vsel %vm1600_vm4, %v2333_v23, %v2329_v46  ;;  %1003 = vadd.xlane.f32.xlu1 %v1002_v17  ;;  %1000 = vadd.xlane.f32.xlu0 %v999_v18  ;;  %v180_v46 = vld [vmem:[%s4970_s0 + $0x520] sm:$0xff]  ;;  %v1504_v7 = vunpack.c.l.b16 %v1137_v26  ;;  %v1505_v8 = vunpack.c.h.b16 %v1137_v26  ;;  %v894_v17 = vsel %vm272_vm0, %v223_v1, 0.0  ;;  %v243_v26 = vld [vmem:[%s4970_s0 + $0x718] sm:$0xff] }
 0x168   :  { %v4182_v37 = vsel %vm1607_vm5, %v2338_v25, %v2334_v34  ;;  %v671_v39 = vpop.xlane.xlu1 %670  ;;  %v908_v20 = vpop.xlane.xlu0 %907  ;;  %v765_v57 = vsel %vm272_vm0, %v180_v46, 0.0  ;;  %v891_v18 = vsel %vm272_vm0, %v222_v5, 0.0  ;;  %v954_v45 = vsel %vm272_vm0, %v243_v26, 0.0 }
 0x169   :  { %v1146_v44 = vpack.c.bf16 %v908_v20, %v905_v15  ;;  %v2551_v32 = vrot.slane %v1504_v7, %v3481_v30  ;;  %v2555_v33 = vrot.slane %v1505_v8, %v3490_v38  ;;  %v951_v46 = vsel %vm272_vm0, %v242_v31, 0.0 }
 0x16b   :  { %v1522_v50 = vunpack.c.l.b16 %v1146_v44  ;;  %v1523_v51 = vunpack.c.h.b16 %v1146_v44  ;;  %571 = vadd.xlane.f32.xlu1 %v570_v40  ;;  %568 = vadd.xlane.f32.xlu0 %v567_v41 }
 0x16c   :  { %v857_v53 = vpop.xlane.xlu1 %856  ;;  %v674_v54 = vpop.xlane.xlu0 %673 }
 0x16d   :  { %v2639_v58 = vrot.slane %v1522_v50, %v3487_v36  ;;  %v2644_v59 = vrot.slane %v1523_v51, %v3499_v42  ;;  %v1107_v61 = vpack.c.bf16 %v674_v54, %v671_v39  ;;  %v132_v51 = vld [vmem:[%s4970_s0 + $0x3a0] sm:$0xff] }
 0x16e   :  { %v621_v5 = vsel %vm272_vm0, %v132_v51, 0.0  ;;  %v116_v51 = vld [vmem:[%s4970_s0 + $0x320] sm:$0xff] }
 0x16f   :  { %v2640_v9 = vsel %vm1586_vm2, %v2639_v58, %v2635_v6  ;;  %v1444_v11 = vunpack.c.l.b16 %v1107_v61  ;;  %v1445_v12 = vunpack.c.h.b16 %v1107_v61  ;;  %769 = vadd.xlane.f32.xlu1 %v768_v55  ;;  %766 = vadd.xlane.f32.xlu0 %v765_v57 }
 0x170   :  { %v2645_v14 = vsel %vm1593_vm3, %v2644_v59, %v2640_v9  ;;  %v725_v15 = vpop.xlane.xlu1 %724  ;;  %v860_v16 = vpop.xlane.xlu0 %859  ;;  %v199_v9 = vld [vmem:[%s4970_s0 + $0x5b8] sm:$0xff] }
 0x171   :  { %v2254_v23 = vrot.slane %v1444_v11, %v3510_v52  ;;  %v2259_v25 = vrot.slane %v1445_v12, %v3519_v60  ;;  %v1138_v29 = vpack.c.bf16 %v860_v16, %v857_v53  ;;  %v2556_v53 = vsel %vm1579_vm1, %v2555_v33, %v2551_v32  ;;  %v198_v11 = vld [vmem:[%s4970_s0 + $0x5b0] sm:$0xff]  ;;  %v260_v33 = vld [vmem:[%s4970_s0 + $0x7a0] sm:$0xff] }
 0x173   :  { %v2255_v34 = vsel %vm1600_vm4, %v2254_v23, %v4160_v0  ;;  %v1506_v39 = vunpack.c.l.b16 %v1138_v29  ;;  %v1507_v20 = vunpack.c.h.b16 %v1138_v29  ;;  %895 = vadd.xlane.f32.xlu1 %v894_v17  ;;  %892 = vadd.xlane.f32.xlu0 %v891_v18  ;;  %v133_v0 = vld [vmem:[%s4970_s0 + $0x3a8] sm:$0xff]  ;;  %v819_v29 = vsel %vm272_vm0, %v198_v11, 0.0 }
 0x174   :  { %v2260_v40 = vsel %vm1607_vm5, %v2259_v25, %v2255_v34  ;;  %v911_v41 = vpop.xlane.xlu1 %910  ;;  %v728_v44 = vpop.xlane.xlu0 %727  ;;  %v624_v1 = vsel %vm272_vm0, %v133_v0, 0.0  ;;  %v822_v25 = vsel %vm272_vm0, %v199_v9, 0.0 }
 0x175   :  { %v2560_v47 = vrot.slane %v1506_v39, %v3487_v36  ;;  %v2565_v49 = vrot.slane %v1507_v20, %v3499_v42  ;;  %v1116_v50 = vpack.c.bf16 %v728_v44, %v725_v15 }
 0x177   :  { %v2561_v54 = vsel %vm1586_vm2, %v2560_v47, %v2556_v53  ;;  %v1462_v55 = vunpack.c.l.b16 %v1116_v50  ;;  %v1463_v57 = vunpack.c.h.b16 %v1116_v50  ;;  %955 = vadd.xlane.f32.xlu1 %v954_v45  ;;  %952 = vadd.xlane.f32.xlu0 %v951_v46  ;;  %v1005_v47 = vsel %vm272_vm0, %v260_v33, 0.0  ;;  %v1171_v53 = vld [vmem:[%s4971_s1 + $0x10] sm:$0xff] }
 0x178   :  { %v2566_v58 = vsel %vm1593_vm3, %v2565_v49, %v2561_v54  ;;  %v677_v59 = vpop.xlane.xlu1 %676  ;;  %v914_v61 = vpop.xlane.xlu0 %913  ;;  %v1175_v54 = vld [vmem:[%s4971_s1 + $0x30] sm:$0xff] }
 0x179   :  { %v2343_v6 = vrot.slane %v1462_v55, %v3526_v2  ;;  %v2348_v7 = vrot.slane %v1463_v57, %v3539_v13  ;;  %v1147_v8 = vpack.c.bf16 %v914_v61, %v911_v41  ;;  %v3111_v61 = vcombine.high %v1171_v53, %v1175_v54 }
 0x17a   :  { %v3110_v9 = vcombine.low %v1171_v53, %v1175_v54 }
 0x17b   :  { %v2344_v12 = vsel %vm1614_vm6, %v2343_v6, %v4182_v37  ;;  %v1524_v15 = vunpack.c.l.b16 %v1147_v8  ;;  %v1525_v16 = vunpack.c.h.b16 %v1147_v8  ;;  %625 = vadd.xlane.f32.xlu1 %v624_v1  ;;  %622 = vadd.xlane.f32.xlu0 %v621_v5  ;;  %v261_v37 = vld [vmem:[%s4970_s0 + $0x7a8] sm:$0xff]  ;;  %v573_v8 = vsel %vm272_vm0, %v116_v51, 0.0 }
 0x17c   :  { %v4248_v17 = vsel %vm4974_vm7, %v2348_v7, %v2344_v12  ;;  %v863_v18 = vpop.xlane.xlu1 %862  ;;  %v680_v23 = vpop.xlane.xlu0 %679  ;;  %v1008_v46 = vsel %vm272_vm0, %v261_v37, 0.0  ;;  %v183_v12 = vld [vmem:[%s4970_s0 + $0x538] sm:$0xff]  ;;  %3009 = vmatprep.subr.bf16.mxu0 %v3111_v61 }
 0x17d   :  { %v2649_v26 = vrot.slane %v1524_v15, %v3510_v52  ;;  %v2654_v31 = vrot.slane %v1525_v16, %v3519_v60  ;;  %v1108_v32 = vpack.c.bf16 %v680_v23, %v677_v59  ;;  %v182_v15 = vld [vmem:[%s4970_s0 + $0x530] sm:$0xff]  ;;  %3010 = vmatpush1.bf16.xpose.msra.mxu0 %v3110_v9 }
 0x17f   :  { %v2650_v34 = vsel %vm1600_vm4, %v2649_v26, %v2645_v14  ;;  %v1446_v39 = vunpack.c.l.b16 %v1108_v32  ;;  %v1447_v20 = vunpack.c.h.b16 %v1108_v32  ;;  %823 = vadd.xlane.f32.xlu1 %v822_v25  ;;  %820 = vadd.xlane.f32.xlu0 %v819_v29  ;;  %v117_v14 = vld [vmem:[%s4970_s0 + $0x328] sm:$0xff]  ;;  %v774_v29 = vsel %vm272_vm0, %v183_v12, 0.0 }
 0x180   :  { %v2655_v41 = vsel %vm1607_vm5, %v2654_v31, %v2650_v34  ;;  %v4262_v44 = vpop.xlane.xlu1 %730  ;;  %v866_v45 = vpop.xlane.xlu0 %865  ;;  %v576_v7 = vsel %vm272_vm0, %v117_v14, 0.0  ;;  %v771_v26 = vsel %vm272_vm0, %v182_v15, 0.0  ;;  %v245_v32 = vld [vmem:[%s4970_s0 + $0x728] sm:$0xff]  ;;  %v263_v15 = vld [vmem:[%s4970_s0 + $0x7b8] sm:$0xff] }
 0x181   :  { %v2264_v49 = vrot.slane %v1446_v39, %v3526_v2  ;;  %v2269_v50 = vrot.slane %v1447_v20, %v3539_v13  ;;  %v1139_v0 = vpack.c.bf16 %v866_v45, %v863_v18  ;;  %v960_v20 = vsel %vm272_vm0, %v245_v32, 0.0 }
 0x182   :  { %v1014_v32 = vsel %vm272_vm0, %v263_v15, 0.0 }
 0x183   :  { %v2265_v55 = vsel %vm1614_vm6, %v2264_v49, %v2260_v40  ;;  %v1508_v57 = vunpack.c.l.b16 %v1139_v0  ;;  %v1509_v59 = vunpack.c.h.b16 %v1139_v0  ;;  %1009 = vadd.xlane.f32.xlu1 %v1008_v46  ;;  %1006 = vadd.xlane.f32.xlu0 %v1005_v47  ;;  %v135_v49 = vld [vmem:[%s4970_s0 + $0x3b8] sm:$0xff] }
 0x184   :  { %v4282_v1 = vsel %vm4974_vm7, %v2269_v50, %v2265_v55  ;;  %v917_v5 = vpop.xlane.xlu1 %916  ;;  %v4284_v6 = vpop.xlane.xlu0 %733  ;;  %v134_v50 = vld [vmem:[%s4970_s0 + $0x3b0] sm:$0xff]  ;;  %v630_v54 = vsel %vm272_vm0, %v135_v49, 0.0 }
 0x185   :  { %v2570_v11 = vrot.slane %v1508_v57, %v3510_v52  ;;  %v2575_v40 = vrot.slane %v1509_v59, %v3519_v60  ;;  %v627_v55 = vsel %vm272_vm0, %v134_v50, 0.0  ;;  %v201_v59 = vld [vmem:[%s4970_s0 + $0x5c8] sm:$0xff] }
 0x186   :  { %v828_v9 = vsel %vm272_vm0, %v201_v59, 0.0 }
 0x187   :  { %v2571_v16 = vsel %vm1600_vm4, %v2570_v11, %v2566_v58  ;;  %577 = vadd.xlane.f32.xlu1 %v576_v7  ;;  %574 = vadd.xlane.f32.xlu0 %v573_v8  ;;  %v244_v58 = vld [vmem:[%s4970_s0 + $0x720] sm:$0xff] }
 0x188   :  { %v2576_v18 = vsel %vm1607_vm5, %v2575_v40, %v2571_v16  ;;  %v4298_v23 = vpop.xlane.xlu1 %682  ;;  %v920_v25 = vpop.xlane.xlu0 %919  ;;  %v957_v45 = vsel %vm272_vm0, %v244_v58, 0.0  ;;  %v262_v16 = vld [vmem:[%s4970_s0 + $0x7b0] sm:$0xff] }
 0x189   :  { %v1148_v31 = vpack.c.bf16 %v920_v25, %v917_v5  ;;  %v1011_v58 = vsel %vm272_vm0, %v262_v16, 0.0 }
 0x18b   :  { %v1526_v37 = vunpack.c.l.b16 %v1148_v31  ;;  %v1527_v33 = vunpack.c.h.b16 %v1148_v31  ;;  %775 = vadd.xlane.f32.xlu1 %v774_v29  ;;  %772 = vadd.xlane.f32.xlu0 %v771_v26 }
 0x18c   :  { %v869_v34 = vpop.xlane.xlu1 %868  ;;  %v4308_v39 = vpop.xlane.xlu0 %685 }
 0x18d   :  { %v2659_v46 = vrot.slane %v1526_v37, %v3526_v2  ;;  %v2664_v47 = vrot.slane %v1527_v33, %v3539_v13  ;;  %v119_v33 = vld [vmem:[%s4970_s0 + $0x338] sm:$0xff] }
 0x18f   :  { %v2660_v0 = vsel %vm1614_vm6, %v2659_v46, %v2655_v41  ;;  %961 = vadd.xlane.f32.xlu1 %v960_v20  ;;  %958 = vadd.xlane.f32.xlu0 %v957_v45  ;;  %v200_v41 = vld [vmem:[%s4970_s0 + $0x5c0] sm:$0xff] }
 0x190   :  { %v2665_v14 = vsel %vm4974_vm7, %v2664_v47, %v2660_v0  ;;  %v4322_v51 = vpop.xlane.xlu1 %736  ;;  %v872_v53 = vpop.xlane.xlu0 %871  ;;  %v825_v11 = vsel %vm272_vm0, %v200_v41, 0.0  ;;  %v582_v47 = vsel %vm272_vm0, %v119_v33, 0.0  ;;  %v1117_v33 = vpack.c.bf16 %v4284_v6, %v4262_v44  ;;  %v202_v44 = vld [vmem:[%s4970_s0 + $0x5d0] sm:$0xff] }
 0x191   :  { %v1140_v57 = vpack.c.bf16 %v872_v53, %v869_v34  ;;  %v185_v53 = vld [vmem:[%s4970_s0 + $0x548] sm:$0xff] }
 0x192   :  { %v1464_v6 = vunpack.c.l.b16 %v1117_v33 }
 0x193   :  { %v1510_v61 = vunpack.c.l.b16 %v1140_v57  ;;  %v1511_v5 = vunpack.c.h.b16 %v1140_v57  ;;  %631 = vadd.xlane.f32.xlu1 %v630_v54  ;;  %628 = vadd.xlane.f32.xlu0 %v627_v55  ;;  %v184_v54 = vld [vmem:[%s4970_s0 + $0x540] sm:$0xff] }
 0x194   :  { %v923_v7 = vpop.xlane.xlu1 %922  ;;  %v4332_v8 = vpop.xlane.xlu0 %739 }
 0x195   :  { %v2580_v40 = vrot.slane %v1510_v61, %v3526_v2  ;;  %v2585_v12 = vrot.slane %v1511_v5, %v3539_v13  ;;  %v780_v61 = vsel %vm272_vm0, %v185_v53, 0.0  ;;  %v777_v5 = vsel %vm272_vm0, %v184_v54, 0.0 }
 0x197   :  { %v2581_v25 = vsel %vm1614_vm6, %v2580_v40, %v2576_v18  ;;  %829 = vadd.xlane.f32.xlu1 %v828_v9  ;;  %826 = vadd.xlane.f32.xlu0 %v825_v11  ;;  %v118_v18 = vld [vmem:[%s4970_s0 + $0x330] sm:$0xff]  ;;  %v247_v9 = vld [vmem:[%s4970_s0 + $0x738] sm:$0xff] }
 0x198   :  { %v2586_v29 = vsel %vm4974_vm7, %v2585_v12, %v2581_v25  ;;  %v4346_v26 = vpop.xlane.xlu1 %688  ;;  %v926_v31 = vpop.xlane.xlu0 %925  ;;  %v579_v49 = vsel %vm272_vm0, %v118_v18, 0.0  ;;  %v246_v11 = vld [vmem:[%s4970_s0 + $0x730] sm:$0xff]  ;;  %v966_v16 = vsel %vm272_vm0, %v247_v9, 0.0  ;;  %vm2864_vm7 = vcmask 1041409  }
 0x199   :  { %v1149_v37 = vpack.c.bf16 %v926_v31, %v923_v7  ;;  %v963_v25 = vsel %vm272_vm0, %v246_v11, 0.0  ;;  %v265_v11 = vld [vmem:[%s4970_s0 + $0x7c8] sm:$0xff] }
 0x19b   :  { %v1528_v34 = vunpack.c.l.b16 %v1149_v37  ;;  %v1529_v20 = vunpack.c.h.b16 %v1149_v37  ;;  %1015 = vadd.xlane.f32.xlu1 %v1014_v32  ;;  %1012 = vadd.xlane.f32.xlu0 %v1011_v58  ;;  %v137_v58 = vld [vmem:[%s4970_s0 + $0x3c8] sm:$0xff]  ;;  %v136_v37 = vld [vmem:[%s4970_s0 + $0x3c0] sm:$0xff] }
 0x19c   :  { %v875_v45 = vpop.xlane.xlu1 %874  ;;  %v4356_v46 = vpop.xlane.xlu0 %691 }
 0x19d   :  { %v2669_v50 = vrot.slane %v1528_v34, %v3545_v22  ;;  %v2674_v0 = vrot.slane %v1529_v20, %v3553_v27 }
 0x19f   :  { %v2670_v55 = vsel %vm1628_vm8, %v2669_v50, %v2665_v14  ;;  %583 = vadd.xlane.f32.xlu1 %v582_v47  ;;  %580 = vadd.xlane.f32.xlu0 %v579_v49  ;;  %v636_v47 = vsel %vm272_vm0, %v137_v58, 0.0  ;;  %v633_v49 = vsel %vm272_vm0, %v136_v37, 0.0  ;;  %v1020_v58 = vsel %vm272_vm0, %v265_v11, 0.0 }
 0x1a0   :  { %v2675_v57 = vsel %vm1635_vm9, %v2674_v0, %v2670_v55  ;;  %v743_v59 = vpop.xlane.xlu1 %742  ;;  %v878_v41 = vpop.xlane.xlu0 %877  ;;  %v203_v0 = vld [vmem:[%s4970_s0 + $0x5d8] sm:$0xff] }
 0x1a1   :  { %v1141_v7 = vpack.c.bf16 %v878_v41, %v875_v45 }
 0x1a3   :  { %v1512_v14 = vunpack.c.l.b16 %v1141_v7  ;;  %v1513_v40 = vunpack.c.h.b16 %v1141_v7  ;;  %781 = vadd.xlane.f32.xlu1 %v780_v61  ;;  %778 = vadd.xlane.f32.xlu0 %v777_v5  ;;  %v834_v61 = vsel %vm272_vm0, %v203_v0, 0.0  ;;  %v831_v5 = vsel %vm272_vm0, %v202_v44, 0.0 }
 0x1a4   :  { %v929_v12 = vpop.xlane.xlu1 %928  ;;  %v746_v15 = vpop.xlane.xlu0 %745 }
 0x1a5   :  { %v2590_v31 = vrot.slane %v1512_v14, %v3545_v22  ;;  %v2595_v32 = vrot.slane %v1513_v40, %v3553_v27  ;;  %v2353_v14 = vrot.slane %v1464_v6, %v3545_v22 }
 0x1a7   :  { %v2591_v18 = vsel %vm1628_vm8, %v2590_v31, %v2586_v29  ;;  %967 = vadd.xlane.f32.xlu1 %v966_v16  ;;  %964 = vadd.xlane.f32.xlu0 %v963_v25  ;;  %v1118_v29 = vpack.c.bf16 %v4332_v8, %v4322_v51  ;;  %v264_v51 = vld [vmem:[%s4970_s0 + $0x7c0] sm:$0xff]  ;;  %v1465_v8 = vunpack.c.h.b16 %v1117_v33  ;;  %v121_v33 = vld [vmem:[%s4970_s0 + $0x348] sm:$0xff] }
 0x1a8   :  { %v4392_v34 = vsel %vm1635_vm9, %v2595_v32, %v2591_v18  ;;  %v4394_v20 = vpop.xlane.xlu1 %694  ;;  %v932_v45 = vpop.xlane.xlu0 %931  ;;  %v1017_v37 = vsel %vm272_vm0, %v264_v51, 0.0  ;;  %v588_v44 = vsel %vm272_vm0, %v121_v33, 0.0 }
 0x1a9   :  { %v1150_v50 = vpack.c.bf16 %v932_v45, %v929_v12  ;;  %v1466_v40 = vunpack.c.l.b16 %v1118_v29  ;;  %v1119_v12 = vpack.c.bf16 %v746_v15, %v743_v59  ;;  %v2358_v59 = vrot.slane %v1465_v8, %v3553_v27 }
 0x1aa   :  { %v1467_v15 = vunpack.c.h.b16 %v1118_v29  ;;  %v2354_v45 = vsel %vm1628_vm8, %v2353_v14, %v4248_v17  ;;  %v187_v29 = vld [vmem:[%s4970_s0 + $0x558] sm:$0xff]  ;;  %v186_v17 = vld [vmem:[%s4970_s0 + $0x550] sm:$0xff] }
 0x1ab   :  { %v1530_v53 = vunpack.c.l.b16 %v1150_v50  ;;  %v1531_v54 = vunpack.c.h.b16 %v1150_v50  ;;  %637 = vadd.xlane.f32.xlu1 %v636_v47  ;;  %634 = vadd.xlane.f32.xlu0 %v633_v49  ;;  %v2363_v47 = vrot.slane %v1466_v40, %v3571_v48  ;;  %v1468_v49 = vunpack.c.l.b16 %v1119_v12 }
 0x1ac   :  { %v803_v55 = vpop.xlane.xlu1 %802  ;;  %v4406_v41 = vpop.xlane.xlu0 %697  ;;  %v786_v14 = vsel %vm272_vm0, %v187_v29, 0.0  ;;  %v783_v40 = vsel %vm272_vm0, %v186_v17, 0.0  ;;  %v139_v29 = vld [vmem:[%s4970_s0 + $0x3d8] sm:$0xff]  ;;  %v138_v17 = vld [vmem:[%s4970_s0 + $0x3d0] sm:$0xff] }
 0x1ad   :  { %v2679_v7 = vrot.slane %v1530_v53, %v3571_v48  ;;  %v2684_v9 = vrot.slane %v1531_v54, %v3581_v56  ;;  %v2359_v54 = vsel %vm1635_vm9, %v2358_v59, %v2354_v45 }
 0x1af   :  { %v2680_v16 = vsel %vm1642_vm10, %v2679_v7, %v2675_v57  ;;  %835 = vadd.xlane.f32.xlu1 %v834_v61  ;;  %832 = vadd.xlane.f32.xlu0 %v831_v5  ;;  %v120_v57 = vld [vmem:[%s4970_s0 + $0x340] sm:$0xff]  ;;  %v1469_v61 = vunpack.c.h.b16 %v1119_v12  ;;  %v2364_v5 = vsel %vm1642_vm10, %v2363_v47, %v2359_v54  ;;  %v2373_v7 = vrot.slane %v1468_v49, %v3588_v3  ;;  %v249_v12 = vld [vmem:[%s4970_s0 + $0x748] sm:$0xff] }
 0x1b0   :  { %v4421_v25 = vsel %vm1649_vm11, %v2684_v9, %v2680_v16  ;;  %v881_v31 = vpop.xlane.xlu1 %880  ;;  %v806_v32 = vpop.xlane.xlu0 %805  ;;  %v585_v6 = vsel %vm272_vm0, %v120_v57, 0.0 }
 0x1b1   :  { %v4425_v18 = vpack.c.bf16 %v806_v32, %v803_v55  ;;  %v2368_v55 = vrot.slane %v1467_v15, %v3581_v56  ;;  %v248_v32 = vld [vmem:[%s4970_s0 + $0x740] sm:$0xff]  ;;  %v2378_v33 = vrot.slane %v1469_v61, %v3591_v4 }
 0x1b3   :  { %1021 = vadd.xlane.f32.xlu1 %v1020_v58  ;;  %1018 = vadd.xlane.f32.xlu0 %v1017_v37  ;;  %v1109_v58 = vpack.c.bf16 %v4308_v39, %v4298_v23  ;;  %v2369_v37 = vsel %vm1649_vm11, %v2368_v55, %v2364_v5  ;;  %v972_v39 = vsel %vm272_vm0, %v249_v12, 0.0  ;;  %v1488_v55 = vunpack.c.l.b16 %v4425_v18 }
 0x1b4   :  { %v4437_v50 = vpop.xlane.xlu1 %553  ;;  %v884_v0 = vpop.xlane.xlu0 %883  ;;  %v2374_v47 = vsel %vm1656_vm12, %v2373_v7, %v2369_v37  ;;  %v1489_v61 = vunpack.c.h.b16 %v4425_v18  ;;  %v1110_v7 = vpack.c.bf16 %v4356_v46, %v4346_v26  ;;  %v205_v26 = vld [vmem:[%s4970_s0 + $0x5e8] sm:$0xff]  ;;  %v204_v46 = vld [vmem:[%s4970_s0 + $0x5e0] sm:$0xff] }
 0x1b5   :  { %v1142_v53 = vpack.c.bf16 %v884_v0, %v881_v31  ;;  %v1448_v54 = vunpack.c.l.b16 %v1109_v58  ;;  %v2379_v5 = vsel %vm1663_vm13, %v2378_v33, %v2374_v47  ;;  %v840_v47 = vsel %vm272_vm0, %v205_v26, 0.0 }
 0x1b6   :  { %v2476_v37 = vrot.slane %v1489_v61, %v3490_v38 }
 0x1b7   :  { %v1514_v9 = vunpack.c.l.b16 %v1142_v53  ;;  %589 = vadd.xlane.f32.xlu1 %v588_v44  ;;  %586 = vadd.xlane.f32.xlu0 %v585_v6  ;;  %v1515_v11 = vunpack.c.h.b16 %v1142_v53  ;;  %v969_v44 = vsel %vm272_vm0, %v248_v32, 0.0  ;;  %v2274_v12 = vrot.slane %v1448_v54, %v3545_v22 }
 0x1b8   :  { %v752_v51 = vpop.xlane.xlu1 %751  ;;  %v749_v8 = vpop.xlane.xlu0 %748  ;;  %v2472_v32 = vrot.slane %v1488_v55, %v3481_v30 }
 0x1b9   :  { %v2600_v16 = vrot.slane %v1514_v9, %v3571_v48  ;;  %v1120_v31 = vpack.c.bf16 %v752_v51, %v749_v8  ;;  %v2605_v57 = vrot.slane %v1515_v11, %v3581_v56  ;;  %v642_v8 = vsel %vm272_vm0, %v139_v29, 0.0 }
 0x1ba   :  { %v2275_v29 = vsel %vm1628_vm8, %v2274_v12, %v4282_v1  ;;  %v123_v1 = vld [vmem:[%s4970_s0 + $0x358] sm:$0xff] }
 0x1bb   :  { %v2601_v59 = vsel %vm1642_vm10, %v2600_v16, %v4392_v34  ;;  %v1470_v15 = vunpack.c.l.b16 %v1120_v31  ;;  %v1471_v45 = vunpack.c.h.b16 %v1120_v31  ;;  %787 = vadd.xlane.f32.xlu1 %v786_v14  ;;  %784 = vadd.xlane.f32.xlu0 %v783_v40  ;;  %v639_v14 = vsel %vm272_vm0, %v138_v17, 0.0 }
 0x1bc   :  { %v4469_v49 = vsel %vm1649_vm11, %v2605_v57, %v2601_v59  ;;  %v758_v0 = vpop.xlane.xlu1 %757  ;;  %v755_v23 = vpop.xlane.xlu0 %754  ;;  %v1449_v16 = vunpack.c.h.b16 %v1109_v58  ;;  %v1450_v58 = vunpack.c.l.b16 %v1110_v7  ;;  %v1111_v57 = vpack.c.bf16 %v4406_v41, %v4394_v20  ;;  %v267_v20 = vld [vmem:[%s4970_s0 + $0x7d8] sm:$0xff]  ;;  %v266_v41 = vld [vmem:[%s4970_s0 + $0x7d0] sm:$0xff] }
 0x1bd   :  { %v2383_v6 = vrot.slane %v1470_v15, %v3606_v19  ;;  %v2388_v53 = vrot.slane %v1471_v45, %v3613_v28  ;;  %v4475_v34 = vpack.c.bf16 %v758_v0, %v755_v23  ;;  %v837_v0 = vsel %vm272_vm0, %v204_v46, 0.0 }
 0x1be   :  { %v2284_v17 = vrot.slane %v1450_v58, %v3571_v48  ;;  %v1452_v54 = vunpack.c.l.b16 %v1111_v57  ;;  %v594_v12 = vsel %vm272_vm0, %v123_v1, 0.0  ;;  %v188_v58 = vld [vmem:[%s4970_s0 + $0x560] sm:$0xff] }
 0x1bf   :  { %973 = vadd.xlane.f32.xlu1 %v972_v39  ;;  %970 = vadd.xlane.f32.xlu0 %v969_v44  ;;  %v2384_v9 = vsel %vm1670_vm14, %v2383_v6, %v2379_v5  ;;  %v2279_v44 = vrot.slane %v1449_v16, %v3553_v27  ;;  %v1451_v6 = vunpack.c.h.b16 %v1110_v7  ;;  %v1023_v7 = vsel %vm272_vm0, %v266_v41, 0.0 }
 0x1c0   :  { %v812_v11 = vpop.xlane.xlu1 %811  ;;  %v809_v51 = vpop.xlane.xlu0 %808  ;;  %v2389_v40 = vsel %vm1677_vm15, %v2388_v53, %v2384_v9  ;;  %v2477_v53 = vsel %vm1579_vm1, %v2476_v37, %v2472_v32  ;;  %v1453_v16 = vunpack.c.h.b16 %v1111_v57 }
 0x1c1   :  { %v1130_v31 = vpack.c.bf16 %v812_v11, %v809_v51  ;;  %v2866_v18 = vsel %vm2864_vm7, %v2389_v40, %v3740_v10  ;;  %v1026_v11 = vsel %vm272_vm0, %v267_v20, 0.0  ;;  %v2289_v40 = vrot.slane %v1451_v6, %v3581_v56 }
 0x1c2   :  { %v2874_v33 = vpack.c.b16 %v2866_v18, %v2866_v18  ;;  %v2294_v18 = vrot.slane %v1452_v54, %v3588_v3  ;;  %v789_v6 = vsel %vm272_vm0, %v188_v58, 0.0  ;;  %v250_v54 = vld [vmem:[%s4970_s0 + $0x750] sm:$0xff] }
 0x1c3   :  { %v1490_v10 = vunpack.c.l.b16 %v1130_v31  ;;  %v1491_v59 = vunpack.c.h.b16 %v1130_v31  ;;  %643 = vadd.xlane.f32.xlu1 %v642_v8  ;;  %640 = vadd.xlane.f32.xlu0 %v639_v14  ;;  %v122_v8 = vld [vmem:[%s4970_s0 + $0x350] sm:$0xff]  ;;  %v2280_v14 = vsel %vm1635_vm9, %v2279_v44, %v2275_v29 }
 0x1c4   :  { %v4505_v15 = vpop.xlane.xlu1 %937  ;;  %2961 = vmatprep.mubr.bf16.mxu1 %v2874_v33  ;;  %v4507_v45 = vpop.xlane.xlu0 %934  ;;  %v2285_v31 = vsel %vm1642_vm10, %v2284_v17, %v2280_v14  ;;  %v591_v32 = vsel %vm272_vm0, %v122_v8, 0.0  ;;  %v189_v33 = vld [vmem:[%s4970_s0 + $0x568] sm:$0xff] }
 0x1c5   :  { %v2481_v23 = vrot.slane %v1490_v10, %v3487_v36  ;;  %v2486_v39 = vrot.slane %v1491_v59, %v3499_v42  ;;  %v2290_v57 = vsel %vm1649_vm11, %v2289_v40, %v2285_v31  ;;  %v2299_v10 = vrot.slane %v1453_v16, %v3591_v4 }
 0x1c6   :  { %v1472_v59 = vunpack.c.l.b16 %v4475_v34  ;;  %v792_v44 = vsel %vm272_vm0, %v189_v33, 0.0  ;;  %v975_v16 = vsel %vm272_vm0, %v250_v54, 0.0 }
 0x1c7   :  { %v2482_v55 = vsel %vm1586_vm2, %v2481_v23, %v2477_v53  ;;  %841 = vadd.xlane.f32.xlu1 %v840_v47  ;;  %838 = vadd.xlane.f32.xlu0 %v837_v0  ;;  %v1473_v47 = vunpack.c.h.b16 %v4475_v34  ;;  %v2295_v0 = vsel %vm1656_vm12, %v2294_v18, %v2290_v57  ;;  %v251_v34 = vld [vmem:[%s4970_s0 + $0x758] sm:$0xff] }
 0x1c8   :  { %v4526_v61 = vsel %vm1593_vm3, %v2486_v39, %v2482_v55  ;;  %v614_v5 = vpop.xlane.xlu1 %613  ;;  %v611_v9 = vpop.xlane.xlu0 %610  ;;  %v2300_v55 = vsel %vm1663_vm13, %v2299_v10, %v2295_v0  ;;  %v978_v40 = vsel %vm272_vm0, %v251_v34, 0.0 }
 0x1c9   :  { %v4530_v51 = vpack.c.bf16 %v614_v5, %v611_v9  ;;  %v2393_v5 = vrot.slane %v1472_v59, %v3481_v30  ;;  %v2397_v9 = vrot.slane %v1473_v47, %v3490_v38 }
 0x1cb   :  { %1027 = vadd.xlane.f32.xlu1 %v1026_v11  ;;  %1024 = vadd.xlane.f32.xlu0 %v1023_v7 }
 0x1cc   :  { %v704_v26 = vpop.xlane.xlu1 %703  ;;  %v701_v46 = vpop.xlane.xlu0 %700 }
 0x1cd   :  { %v1112_v37 = vpack.c.bf16 %v704_v26, %v701_v46 }
 0x1cf   :  { %v1454_v23 = vunpack.c.l.b16 %v1112_v37  ;;  %v1455_v39 = vunpack.c.h.b16 %v1112_v37  ;;  %595 = vadd.xlane.f32.xlu1 %v594_v12  ;;  %592 = vadd.xlane.f32.xlu0 %v591_v32  ;;  %v141_v12 = vld [vmem:[%s4970_s0 + $0x3e8] sm:$0xff]  ;;  %v140_v32 = vld [vmem:[%s4970_s0 + $0x3e0] sm:$0xff]  ;;  %v2398_v37 = vsel %vm1579_vm1, %v2397_v9, %v2393_v5 }
 0x1d0   :  { %v764_v20 = vpop.xlane.xlu1 %763  ;;  %v761_v41 = vpop.xlane.xlu0 %760  ;;  %v648_v59 = vsel %vm272_vm0, %v141_v12, 0.0  ;;  %v645_v47 = vsel %vm272_vm0, %v140_v32, 0.0  ;;  %v191_v32 = vld [vmem:[%s4970_s0 + $0x578] sm:$0xff] }
 0x1d1   :  { %v2304_v53 = vrot.slane %v1454_v23, %v3606_v19  ;;  %v2309_v29 = vrot.slane %v1455_v39, %v3613_v28  ;;  %v1122_v17 = vpack.c.bf16 %v764_v20, %v761_v41  ;;  %v207_v23 = vld [vmem:[%s4970_s0 + $0x5f8] sm:$0xff]  ;;  %v206_v39 = vld [vmem:[%s4970_s0 + $0x5f0] sm:$0xff] }
 0x1d3   :  { %v1474_v11 = vunpack.c.l.b16 %v1122_v17  ;;  %v1475_v7 = vunpack.c.h.b16 %v1122_v17  ;;  %793 = vadd.xlane.f32.xlu1 %v792_v44  ;;  %790 = vadd.xlane.f32.xlu0 %v789_v6  ;;  %v2305_v1 = vsel %vm1670_vm14, %v2304_v53, %v2300_v55  ;;  %v846_v44 = vsel %vm272_vm0, %v207_v23, 0.0  ;;  %v269_v53 = vld [vmem:[%s4970_s0 + $0x7e8] sm:$0xff] }
 0x1d4   :  { %v4569_v8 = vpop.xlane.xlu1 %889  ;;  %v4571_v14 = vpop.xlane.xlu0 %886  ;;  %v2310_v31 = vsel %vm1677_vm15, %v2309_v29, %v2305_v1  ;;  %v843_v6 = vsel %vm272_vm0, %v206_v39, 0.0  ;;  %v268_v29 = vld [vmem:[%s4970_s0 + $0x7e0] sm:$0xff]  ;;  %v1087_v17 = vpack.c.bf16 %v4437_v50, %v4084_v24  ;;  %v1032_v55 = vsel %vm272_vm0, %v269_v53, 0.0 }
 0x1d5   :  { %v2402_v18 = vrot.slane %v1474_v11, %v3487_v36  ;;  %v2407_v26 = vrot.slane %v1475_v7, %v3499_v42  ;;  %v2865_v46 = vsel %vm2864_vm7, %v2310_v31, %v3643_v62  ;;  %v1029_v5 = vsel %vm272_vm0, %v268_v29, 0.0  ;;  %v125_v11 = vld [vmem:[%s4970_s0 + $0x368] sm:$0xff]  ;;  %v124_v7 = vld [vmem:[%s4970_s0 + $0x360] sm:$0xff] }
 0x1d6   :  { %v2873_v33 = vpack.c.b16 %v2865_v46, %v2865_v46  ;;  %v1424_v1 = vunpack.c.l.b16 %v4530_v51  ;;  %v1425_v24 = vunpack.c.h.b16 %v4530_v51  ;;  %v1151_v50 = vpack.c.bf16 %v4505_v15, %v4507_v45  ;;  %v190_v51 = vld [vmem:[%s4970_s0 + $0x570] sm:$0xff] }
 0x1d7   :  { %v2403_v58 = vsel %vm1586_vm2, %v2402_v18, %v2398_v37  ;;  %979 = vadd.xlane.f32.xlu1 %v978_v40  ;;  %976 = vadd.xlane.f32.xlu0 %v975_v16  ;;  %v1404_v40 = vunpack.c.l.b16 %v1087_v17  ;;  %v600_v18 = vsel %vm272_vm0, %v125_v11, 0.0 }
 0x1d8   :  { %v4589_v57 = vsel %vm1593_vm3, %v2407_v26, %v2403_v58  ;;  %v998_v10 = vpop.xlane.xlu1 %997  ;;  %2962 = vmatmul.mubr.bf16.vlgmr.msra.gmra.mrb[0].mxu1 %v2873_v33  ;;  %v995_v62 = vpop.xlane.xlu0 %994  ;;  %v597_v26 = vsel %vm272_vm0, %v124_v7, 0.0  ;;  %v2156_v15 = vrot.slane %v1424_v1, %v3481_v30  ;;  %v2160_v45 = vrot.slane %v1425_v24, %v3490_v38  ;;  %v143_v24 = vld [vmem:[%s4970_s0 + $0x3f8] sm:$0xff] }
 0x1d9   :  { %v4593_v0 = vpack.c.bf16 %v998_v10, %v995_v62  ;;  %v1532_v37 = vunpack.c.l.b16 %v1151_v50  ;;  %v253_v10 = vld [vmem:[%s4970_s0 + $0x768] sm:$0xff]  ;;  %v252_v62 = vld [vmem:[%s4970_s0 + $0x760] sm:$0xff] }
 0x1db   :  { %649 = vadd.xlane.f32.xlu1 %v648_v59  ;;  %646 = vadd.xlane.f32.xlu0 %v645_v47  ;;  %v1405_v59 = vunpack.c.h.b16 %v1087_v17  ;;  %v2057_v47 = vrot.slane %v1404_v40, %v3588_v3  ;;  %v981_v17 = vsel %vm272_vm0, %v252_v62, 0.0 }
 0x1dc   :  { %v560_v20 = vpop.xlane.xlu1 %559  ;;  %v557_v41 = vpop.xlane.xlu0 %556 }
 0x1dd   :  { %v1088_v46 = vpack.c.bf16 %v560_v20, %v557_v41  ;;  %v798_v20 = vsel %vm272_vm0, %v191_v32, 0.0  ;;  %v795_v41 = vsel %vm272_vm0, %v190_v51, 0.0  ;;  %v2062_v40 = vrot.slane %v1405_v59, %v3591_v4 }
 0x1de   :  { %v1552_v59 = vunpack.c.l.b16 %v4593_v0 }
 0x1df   :  { %847 = vadd.xlane.f32.xlu1 %v846_v44  ;;  %844 = vadd.xlane.f32.xlu0 %v843_v6  ;;  %v1406_v44 = vunpack.c.l.b16 %v1088_v46 }
 0x1e0   :  { %v566_v34 = vpop.xlane.xlu1 %565  ;;  %v563_v54 = vpop.xlane.xlu0 %562 }
 0x1e1   :  { %v4613_v9 = vpack.c.bf16 %v566_v34, %v563_v54  ;;  %v1533_v34 = vunpack.c.h.b16 %v1151_v50  ;;  %v2161_v54 = vsel %vm1579_vm1, %v2160_v45, %v2156_v15  ;;  %v142_v50 = vld [vmem:[%s4970_s0 + $0x3f0] sm:$0xff]  ;;  %v2067_v32 = vrot.slane %v1406_v44, %v3606_v19 }
 0x1e3   :  { %1033 = vadd.xlane.f32.xlu1 %v1032_v55  ;;  %1030 = vadd.xlane.f32.xlu0 %v1029_v5  ;;  %v984_v55 = vsel %vm272_vm0, %v253_v10, 0.0  ;;  %v2689_v5 = vrot.slane %v1532_v37, %v3588_v3  ;;  %v2694_v37 = vrot.slane %v1533_v34, %v3591_v4  ;;  %v1553_v34 = vunpack.c.h.b16 %v4593_v0 }
 0x1e4   :  { %v620_v16 = vpop.xlane.xlu1 %619  ;;  %v617_v31 = vpop.xlane.xlu0 %616  ;;  %v2788_v0 = vrot.slane %v1552_v59, %v3481_v30 }
 0x1e5   :  { %v1098_v12 = vpack.c.bf16 %v620_v16, %v617_v31  ;;  %v1407_v16 = vunpack.c.h.b16 %v1088_v46  ;;  %v651_v46 = vsel %vm272_vm0, %v142_v50, 0.0  ;;  %v1143_v50 = vpack.c.bf16 %v4569_v8, %v4571_v14 }
 0x1e7   :  { %v1426_v33 = vunpack.c.l.b16 %v1098_v12  ;;  %v1427_v58 = vunpack.c.h.b16 %v1098_v12  ;;  %601 = vadd.xlane.f32.xlu1 %v600_v18  ;;  %598 = vadd.xlane.f32.xlu0 %v597_v26  ;;  %v2058_v12 = vsel %vm1656_vm12, %v2057_v47, %v4098_v35  ;;  %v2690_v35 = vsel %vm1656_vm12, %v2689_v5, %v4421_v25  ;;  %v271_v25 = vld [vmem:[%s4970_s0 + $0x7f8] sm:$0xff] }
 0x1e8   :  { %v818_v23 = vpop.xlane.xlu1 %817  ;;  %v815_v39 = vpop.xlane.xlu0 %814  ;;  %v2072_v47 = vrot.slane %v1407_v16, %v3613_v28  ;;  %v1516_v59 = vunpack.c.l.b16 %v1143_v50 }
 0x1e9   :  { %v2165_v6 = vrot.slane %v1426_v33, %v3487_v36  ;;  %v2170_v53 = vrot.slane %v1427_v58, %v3499_v42  ;;  %v1131_v29 = vpack.c.bf16 %v818_v23, %v815_v39  ;;  %v654_v33 = vsel %vm272_vm0, %v143_v24, 0.0 }
 0x1eb   :  { %v2166_v11 = vsel %vm1586_vm2, %v2165_v6, %v2161_v54  ;;  %v1492_v7 = vunpack.c.l.b16 %v1131_v29  ;;  %v1493_v1 = vunpack.c.h.b16 %v1131_v29  ;;  %799 = vadd.xlane.f32.xlu1 %v798_v20  ;;  %796 = vadd.xlane.f32.xlu0 %v795_v41  ;;  %v2063_v41 = vsel %vm1663_vm13, %v2062_v40, %v2058_v12 }
 0x1ec   :  { %v4659_v31 = vsel %vm1593_vm3, %v2170_v53, %v2166_v11  ;;  %v944_v18 = vpop.xlane.xlu1 %943  ;;  %v941_v26 = vpop.xlane.xlu0 %940  ;;  %v270_v53 = vld [vmem:[%s4970_s0 + $0x7f0] sm:$0xff]  ;;  %v2068_v29 = vsel %vm1670_vm14, %v2067_v32, %v2063_v41  ;;  %v2695_v54 = vsel %vm1663_vm13, %v2694_v37, %v2690_v35  ;;  %v1038_v11 = vsel %vm272_vm0, %v271_v25, 0.0  ;;  %v1170_v41 = vld [vmem:[%s4971_s1 + $0x8] sm:$0xff] }
 0x1ed   :  { %v2491_v51 = vrot.slane %v1492_v7, %v3510_v52  ;;  %v2496_v15 = vrot.slane %v1493_v1, %v3519_v60  ;;  %v1152_v45 = vpack.c.bf16 %v944_v18, %v941_v26  ;;  %v1035_v7 = vsel %vm272_vm0, %v270_v53, 0.0  ;;  %v127_v18 = vld [vmem:[%s4970_s0 + $0x378] sm:$0xff]  ;;  %v126_v26 = vld [vmem:[%s4970_s0 + $0x370] sm:$0xff] }
 0x1ee   :  { %v2073_v1 = vsel %vm1677_vm15, %v2072_v47, %v2068_v29  ;;  %v2792_v12 = vrot.slane %v1553_v34, %v3490_v38  ;;  %v1408_v32 = vunpack.c.l.b16 %v4613_v9  ;;  %v254_v35 = vld [vmem:[%s4970_s0 + $0x770] sm:$0xff] }
 0x1ef   :  { %v2492_v58 = vsel %vm1600_vm4, %v2491_v51, %v4526_v61  ;;  %v1534_v10 = vunpack.c.l.b16 %v1152_v45  ;;  %v1535_v62 = vunpack.c.h.b16 %v1152_v45  ;;  %985 = vadd.xlane.f32.xlu1 %v984_v55  ;;  %982 = vadd.xlane.f32.xlu0 %v981_v17  ;;  %v1409_v51 = vunpack.c.h.b16 %v4613_v9  ;;  %v255_v9 = vld [vmem:[%s4970_s0 + $0x778] sm:$0xff] }
 0x1f0   :  { %v4676_v23 = vsel %vm1607_vm5, %v2496_v15, %v2492_v58  ;;  %v950_v39 = vpop.xlane.xlu1 %949  ;;  %v947_v20 = vpop.xlane.xlu0 %946  ;;  %v2793_v47 = vsel %vm1579_vm1, %v2792_v12, %v2788_v0  ;;  %v1517_v0 = vunpack.c.h.b16 %v1143_v50 }
 0x1f1   :  { %v2699_v61 = vrot.slane %v1534_v10, %v3606_v19  ;;  %v2704_v44 = vrot.slane %v1535_v62, %v3613_v28  ;;  %v4681_v6 = vpack.c.bf16 %v950_v39, %v947_v20  ;;  %v2077_v39 = vrot.slane %v1408_v32, %v3481_v30 }
 0x1f2   :  { %v2081_v20 = vrot.slane %v1409_v51, %v3490_v38 }
 0x1f3   :  { %655 = vadd.xlane.f32.xlu1 %v654_v33  ;;  %652 = vadd.xlane.f32.xlu0 %v651_v46  ;;  %v2700_v55 = vsel %vm1670_vm14, %v2699_v61, %v2695_v54  ;;  %v606_v33 = vsel %vm272_vm0, %v127_v18, 0.0  ;;  %v603_v46 = vsel %vm272_vm0, %v126_v26, 0.0  ;;  %v1174_v61 = vld [vmem:[%s4971_s1 + $0x28] sm:$0xff] }
 0x1f4   :  { %v1004_v17 = vpop.xlane.xlu1 %1003  ;;  %v1001_v5 = vpop.xlane.xlu0 %1000  ;;  %v2705_v24 = vsel %vm1677_vm15, %v2704_v44, %v2700_v55  ;;  %v3109_v29 = vcombine.high %v1170_v41, %v1174_v61 }
 0x1f5   :  { %v1162_v40 = vpack.c.bf16 %v1004_v17, %v1001_v5  ;;  %v2870_v16 = vsel %vm2864_vm7, %v2705_v24, %v2073_v1  ;;  %v990_v17 = vsel %vm272_vm0, %v255_v9, 0.0  ;;  %v987_v5 = vsel %vm272_vm0, %v254_v35, 0.0 }
 0x1f6   :  { %v2878_v8 = vpack.c.b16 %v2870_v16, %v2870_v16  ;;  %2969 = vmatprep.subr.bf16.mxu1 %v3109_v29  ;;  %v2610_v16 = vrot.slane %v1516_v59, %v3588_v3  ;;  %vm4975_vm0 = vcmask 523712  }
 0x1f7   :  { %v1554_v14 = vunpack.c.l.b16 %v1162_v40  ;;  %v1555_v15 = vunpack.c.h.b16 %v1162_v40  ;;  %1039 = vadd.xlane.f32.xlu1 %v1038_v11  ;;  %1036 = vadd.xlane.f32.xlu0 %v1035_v7  ;;  %v3108_v11 = vcombine.low %v1170_v41, %v1174_v61  ;;  %v2082_v40 = vsel %vm1579_vm1, %v2081_v20, %v2077_v39 }
 0x1f8   :  { %v572_v45 = vpop.xlane.xlu1 %571  ;;  %3041 = vmatprep.mubr.bf16.mxu0 %v2878_v8  ;;  %v569_v37 = vpop.xlane.xlu0 %568 }
 0x1f9   :  { %v2797_v58 = vrot.slane %v1554_v14, %v3487_v36  ;;  %v2802_v10 = vrot.slane %v1555_v15, %v3499_v42  ;;  %v1090_v62 = vpack.c.bf16 %v572_v45, %v569_v37  ;;  %2970 = vmatpush1.bf16.xpose.msra.mxu1 %v3108_v11  ;;  %v2615_v45 = vrot.slane %v1517_v0, %v3591_v4 }
 0x1fa   :  { %v1536_v37 = vunpack.c.l.b16 %v4681_v6 }
 0x1fb   :  { %v2798_v44 = vsel %vm1586_vm2, %v2797_v58, %v2793_v47  ;;  %v1410_v25 = vunpack.c.l.b16 %v1090_v62  ;;  %v1411_v53 = vunpack.c.h.b16 %v1090_v62  ;;  %607 = vadd.xlane.f32.xlu1 %v606_v33  ;;  %604 = vadd.xlane.f32.xlu0 %v603_v46  ;;  %v1537_v33 = vunpack.c.h.b16 %v4681_v6 }
 0x1fc   :  { %v4731_v34 = vsel %vm1593_vm3, %v2802_v10, %v2798_v44  ;;  %v770_v54 = vpop.xlane.xlu1 %769  ;;  %v767_v55 = vpop.xlane.xlu0 %766  ;;  %v2611_v46 = vsel %vm1656_vm12, %v2610_v16, %v4469_v49  ;;  %v2709_v41 = vrot.slane %v1536_v37, %v3481_v30 }
 0x1fd   :  { %v2086_v7 = vrot.slane %v1410_v25, %v3487_v36  ;;  %v2091_v1 = vrot.slane %v1411_v53, %v3499_v42  ;;  %v1123_v24 = vpack.c.bf16 %v770_v54, %v767_v55  ;;  %v2616_v6 = vsel %vm1663_vm13, %v2615_v45, %v2611_v46 }
 0x1fe   :  { %v2713_v49 = vrot.slane %v1537_v33, %v3490_v38 }
 0x1ff   :  { %v2087_v18 = vsel %vm1586_vm2, %v2086_v7, %v2082_v40  ;;  %v1476_v26 = vunpack.c.l.b16 %v1123_v24  ;;  %v1477_v12 = vunpack.c.h.b16 %v1123_v24  ;;  %991 = vadd.xlane.f32.xlu1 %v990_v17  ;;  %988 = vadd.xlane.f32.xlu0 %v987_v5 }
 0x200   :  { %v4741_v32 = vsel %vm1593_vm3, %v2091_v1, %v2087_v18  ;;  %v896_v51 = vpop.xlane.xlu1 %895  ;;  %v893_v8 = vpop.xlane.xlu0 %892  ;;  %v2714_v30 = vsel %vm1579_vm1, %v2713_v49, %v2709_v41  ;;  %v1176_v18 = vld [vmem:[%s4971_s1 + $0x38] sm:$0xff]  ;;  %vm4976_vm1 = vmmov %vm4975_vm0 }
 0x201   :  { %v2412_v14 = vrot.slane %v1476_v26, %v3510_v52  ;;  %v2417_v50 = vrot.slane %v1477_v12, %v3519_v60  ;;  %v1144_v15 = vpack.c.bf16 %v896_v51, %v893_v8 }
 0x203   :  { %v2413_v58 = vsel %vm1600_vm4, %v2412_v14, %v4589_v57  ;;  %v1518_v10 = vunpack.c.l.b16 %v1144_v15  ;;  %v1519_v62 = vunpack.c.h.b16 %v1144_v15 }
 0x204   :  { %v4753_v9 = vsel %vm1607_vm5, %v2417_v50, %v2413_v58  ;;  %v956_v35 = vpop.xlane.xlu1 %955  ;;  %v953_v59 = vpop.xlane.xlu0 %952 }
 0x205   :  { %v2620_v47 = vrot.slane %v1518_v10, %v3606_v19  ;;  %v2625_v39 = vrot.slane %v1519_v62, %v3613_v28  ;;  %v1154_v20 = vpack.c.bf16 %v956_v35, %v953_v59 }
 0x207   :  { %v1538_v61 = vunpack.c.l.b16 %v1154_v20  ;;  %v1539_v57 = vunpack.c.h.b16 %v1154_v20  ;;  %v2621_v44 = vsel %vm1670_vm14, %v2620_v47, %v2616_v6 }
 0x208   :  { %v626_v25 = vpop.xlane.xlu1 %625  ;;  %v623_v53 = vpop.xlane.xlu0 %622  ;;  %v2626_v29 = vsel %vm1677_vm15, %v2625_v39, %v2621_v44 }
 0x209   :  { %v2718_v54 = vrot.slane %v1538_v61, %v3487_v36  ;;  %v2723_v55 = vrot.slane %v1539_v57, %v3499_v42  ;;  %v1099_v17 = vpack.c.bf16 %v626_v25, %v623_v53  ;;  %v2869_v5 = vsel %vm2864_vm7, %v2626_v29, %v4031_v63  ;;  %v1172_v63 = vld [vmem:[%s4971_s1 + $0x18] sm:$0xff] }
 0x20a   :  { %v2877_v11 = vpack.c.b16 %v2869_v5, %v2869_v5  ;;  %v3113_v8 = vcombine.high %v1172_v63, %v1176_v18  ;;  %v3112_v45 = vcombine.low %v1172_v63, %v1176_v18 }
 0x20b   :  { %v2719_v38 = vsel %vm1586_vm2, %v2718_v54, %v2714_v30  ;;  %v1428_v7 = vunpack.c.l.b16 %v1099_v17  ;;  %v1429_v1 = vunpack.c.h.b16 %v1099_v17  ;;  %vm4977_vm2 = vmmov %vm4975_vm0 }
 0x20c   :  { %v2724_v24 = vsel %vm1593_vm3, %v2723_v55, %v2719_v38  ;;  %v824_v0 = vpop.xlane.xlu1 %823  ;;  %3042 = vmatmul.mubr.bf16.vlgmr.msra.gmra.mrb[0].mxu0 %v2877_v11  ;;  %v821_v40 = vpop.xlane.xlu0 %820  ;;  %3049 = vmatprep.subr.bf16.mxu0 %v3113_v8  ;;  %vm4978_vm3 = vmmov %vm4975_vm0 }
 0x20d   :  { %v2175_v36 = vrot.slane %v1428_v7, %v3510_v52  ;;  %v2180_v42 = vrot.slane %v1429_v1, %v3519_v60  ;;  %v1132_v16 = vpack.c.bf16 %v824_v0, %v821_v40  ;;  %3050 = vmatpush1.bf16.xpose.msra.mxu0 %v3112_v45 }
 0x20f   :  { %v2176_v26 = vsel %vm1600_vm4, %v2175_v36, %v4659_v31  ;;  %v1494_v12 = vunpack.c.l.b16 %v1132_v16  ;;  %v1495_v51 = vunpack.c.h.b16 %v1132_v16 }
 0x210   :  { %v2181_v14 = vsel %vm1607_vm5, %v2180_v42, %v2176_v26  ;;  %v1010_v50 = vpop.xlane.xlu1 %1009  ;;  %v1007_v15 = vpop.xlane.xlu0 %1006 }
 0x211   :  { %v2501_v37 = vrot.slane %v1494_v12, %v3526_v2  ;;  %v2506_v33 = vrot.slane %v1495_v51, %v3539_v13  ;;  %v1163_v46 = vpack.c.bf16 %v1010_v50, %v1007_v15 }
 0x213   :  { %v2502_v58 = vsel %vm1614_vm6, %v2501_v37, %v4676_v23  ;;  %v1556_v10 = vunpack.c.l.b16 %v1163_v46  ;;  %v1557_v31 = vunpack.c.h.b16 %v1163_v46 }
 0x214   :  { %v2507_v62 = vsel %vm4975_vm0, %v2506_v33, %v2502_v58  ;;  %v578_v35 = vpop.xlane.xlu1 %577  ;;  %v575_v59 = vpop.xlane.xlu0 %574 }
 0x215   :  { %v2807_v47 = vrot.slane %v1556_v10, %v3510_v52  ;;  %v2812_v39 = vrot.slane %v1557_v31, %v3519_v60  ;;  %v1091_v20 = vpack.c.bf16 %v578_v35, %v575_v59 }
 0x217   :  { %v2808_v6 = vsel %vm1600_vm4, %v2807_v47, %v4731_v34  ;;  %v1412_v41 = vunpack.c.l.b16 %v1091_v20  ;;  %v1413_v49 = vunpack.c.h.b16 %v1091_v20 }
 0x218   :  { %v2813_v61 = vsel %vm1607_vm5, %v2812_v39, %v2808_v6  ;;  %v776_v57 = vpop.xlane.xlu1 %775  ;;  %v773_v23 = vpop.xlane.xlu0 %772 }
 0x219   :  { %v2096_v44 = vrot.slane %v1412_v41, %v3510_v52  ;;  %v2101_v25 = vrot.slane %v1413_v49, %v3519_v60  ;;  %v1124_v53 = vpack.c.bf16 %v776_v57, %v773_v23 }
 0x21b   :  { %v2097_v29 = vsel %vm1600_vm4, %v2096_v44, %v4741_v32  ;;  %v1478_v54 = vunpack.c.l.b16 %v1124_v53  ;;  %v1479_v55 = vunpack.c.h.b16 %v1124_v53 }
 0x21c   :  { %v2102_v17 = vsel %vm1607_vm5, %v2101_v25, %v2097_v29  ;;  %v962_v5 = vpop.xlane.xlu1 %961  ;;  %v959_v34 = vpop.xlane.xlu0 %958 }
 0x21d   :  { %v2422_v30 = vrot.slane %v1478_v54, %v3526_v2  ;;  %v2427_v11 = vrot.slane %v1479_v55, %v3539_v13  ;;  %v1155_v38 = vpack.c.bf16 %v962_v5, %v959_v34 }
 0x21f   :  { %v2423_v7 = vsel %vm1614_vm6, %v2422_v30, %v4753_v9  ;;  %v1540_v1 = vunpack.c.l.b16 %v1155_v38  ;;  %v1541_v0 = vunpack.c.h.b16 %v1155_v38 }
 0x220   :  { %v2428_v40 = vsel %vm4976_vm1, %v2427_v11, %v2423_v7  ;;  %v632_v36 = vpop.xlane.xlu1 %631  ;;  %v629_v32 = vpop.xlane.xlu0 %628 }
 0x221   :  { %v2728_v42 = vrot.slane %v1540_v1, %v3510_v52  ;;  %v2733_v16 = vrot.slane %v1541_v0, %v3519_v60  ;;  %v1100_v63 = vpack.c.bf16 %v632_v36, %v629_v32 }
 0x223   :  { %v2729_v18 = vsel %vm1600_vm4, %v2728_v42, %v2724_v24  ;;  %v1430_v26 = vunpack.c.l.b16 %v1100_v63  ;;  %v1431_v12 = vunpack.c.h.b16 %v1100_v63  ;;  %vm4979_vm4 = vmmov %vm4975_vm0 }
 0x224   :  { %v2734_v51 = vsel %vm1607_vm5, %v2733_v16, %v2729_v18  ;;  %v830_v8 = vpop.xlane.xlu1 %829  ;;  %v827_v50 = vpop.xlane.xlu0 %826  ;;  %vm4980_vm5 = vmmov %vm4975_vm0 }
 0x225   :  { %v2185_v9 = vrot.slane %v1430_v26, %v3526_v2  ;;  %v2190_v15 = vrot.slane %v1431_v12, %v3539_v13  ;;  %v1133_v45 = vpack.c.bf16 %v830_v8, %v827_v50 }
 0x227   :  { %v2186_v37 = vsel %vm1614_vm6, %v2185_v9, %v2181_v14  ;;  %v1496_v33 = vunpack.c.l.b16 %v1133_v45  ;;  %v1497_v52 = vunpack.c.h.b16 %v1133_v45 }
 0x228   :  { %v2191_v60 = vsel %vm4977_vm2, %v2190_v15, %v2186_v37  ;;  %v1016_v46 = vpop.xlane.xlu1 %1015  ;;  %v1013_v58 = vpop.xlane.xlu0 %1012 }
 0x229   :  { %v2511_v24 = vrot.slane %v1496_v33, %v3545_v22  ;;  %v2516_v10 = vrot.slane %v1497_v52, %v3553_v27  ;;  %v1164_v31 = vpack.c.bf16 %v1016_v46, %v1013_v58 }
 0x22b   :  { %v2512_v35 = vsel %vm1628_vm8, %v2511_v24, %v2507_v62  ;;  %v1558_v59 = vunpack.c.l.b16 %v1164_v31  ;;  %v1559_v47 = vunpack.c.h.b16 %v1164_v31 }
 0x22c   :  { %v4812_v39 = vsel %vm1635_vm9, %v2516_v10, %v2512_v35  ;;  %v584_v20 = vpop.xlane.xlu1 %583  ;;  %v581_v14 = vpop.xlane.xlu0 %580 }
 0x22d   :  { %v2817_v6 = vrot.slane %v1558_v59, %v3526_v2  ;;  %v2822_v41 = vrot.slane %v1559_v47, %v3539_v13  ;;  %v1092_v49 = vpack.c.bf16 %v584_v20, %v581_v14 }
 0x22f   :  { %v2818_v57 = vsel %vm1614_vm6, %v2817_v6, %v2813_v61  ;;  %v1414_v23 = vunpack.c.l.b16 %v1092_v49  ;;  %v1415_v44 = vunpack.c.h.b16 %v1092_v49 }
 0x230   :  { %v4818_v25 = vsel %vm4978_vm3, %v2822_v41, %v2818_v57  ;;  %v782_v62 = vpop.xlane.xlu1 %781  ;;  %v779_v53 = vpop.xlane.xlu0 %778 }
 0x231   :  { %v2106_v29 = vrot.slane %v1414_v23, %v3526_v2  ;;  %v2111_v54 = vrot.slane %v1415_v44, %v3539_v13  ;;  %v1125_v55 = vpack.c.bf16 %v782_v62, %v779_v53 }
 0x233   :  { %v2107_v5 = vsel %vm1614_vm6, %v2106_v29, %v2102_v17  ;;  %v1480_v34 = vunpack.c.l.b16 %v1125_v55  ;;  %v1481_v30 = vunpack.c.h.b16 %v1125_v55 }
 0x234   :  { %v2112_v11 = vsel %vm4979_vm4, %v2111_v54, %v2107_v5  ;;  %v968_v38 = vpop.xlane.xlu1 %967  ;;  %v965_v61 = vpop.xlane.xlu0 %964 }
 0x235   :  { %v2432_v7 = vrot.slane %v1480_v34, %v3545_v22  ;;  %v2437_v1 = vrot.slane %v1481_v30, %v3553_v27  ;;  %v1156_v0 = vpack.c.bf16 %v968_v38, %v965_v61 }
 0x237   :  { %v2433_v36 = vsel %vm1628_vm8, %v2432_v7, %v2428_v40  ;;  %v1542_v32 = vunpack.c.l.b16 %v1156_v0  ;;  %v1543_v42 = vunpack.c.h.b16 %v1156_v0 }
 0x238   :  { %v4828_v16 = vsel %vm1635_vm9, %v2437_v1, %v2433_v36  ;;  %v638_v63 = vpop.xlane.xlu1 %637  ;;  %v635_v17 = vpop.xlane.xlu0 %634 }
 0x239   :  { %v2738_v18 = vrot.slane %v1542_v32, %v3526_v2  ;;  %v2743_v26 = vrot.slane %v1543_v42, %v3539_v13  ;;  %v1101_v12 = vpack.c.bf16 %v638_v63, %v635_v17 }
 0x23b   :  { %v2739_v8 = vsel %vm1614_vm6, %v2738_v18, %v2734_v51  ;;  %v1432_v50 = vunpack.c.l.b16 %v1101_v12  ;;  %v1433_v9 = vunpack.c.h.b16 %v1101_v12  ;;  %vm3089_vm6 = vcmask 123904  }
 0x23c   :  { %v4834_v15 = vsel %vm4980_vm5, %v2743_v26, %v2739_v8  ;;  %v836_v40 = vpop.xlane.xlu1 %835  ;;  %v833_v45 = vpop.xlane.xlu0 %832 }
 0x23d   :  { %v2195_v37 = vrot.slane %v1432_v50, %v3545_v22  ;;  %v2200_v33 = vrot.slane %v1433_v9, %v3553_v27  ;;  %v1134_v55 = vpack.c.bf16 %v836_v40, %v833_v45 }
 0x23f   :  { %v2196_v52 = vsel %vm1628_vm8, %v2195_v37, %v2191_v60  ;;  %v1498_v30 = vunpack.c.l.b16 %v1134_v55  ;;  %v1499_v7 = vunpack.c.h.b16 %v1134_v55 }
 0x240   :  { %v4840_v2 = vsel %vm1635_vm9, %v2200_v33, %v2196_v52  ;;  %v1022_v13 = vpop.xlane.xlu1 %1021  ;;  %v1019_v46 = vpop.xlane.xlu0 %1018 }
 0x241   :  { %v2521_v1 = vrot.slane %v1498_v30, %v3571_v48  ;;  %v2526_v63 = vrot.slane %v1499_v7, %v3581_v56  ;;  %v1165_v17 = vpack.c.bf16 %v1022_v13, %v1019_v46 }
 0x243   :  { %v2522_v26 = vsel %vm1642_vm10, %v2521_v1, %v4812_v39  ;;  %v1560_v33 = vunpack.c.l.b16 %v1165_v17 }
 0x244   :  { %v590_v58 = vpop.xlane.xlu1 %589  ;;  %v587_v51 = vpop.xlane.xlu0 %586  ;;  %v2527_v37 = vsel %vm1649_vm11, %v2526_v63, %v2522_v26 }
 0x245   :  { %v1093_v24 = vpack.c.bf16 %v590_v58, %v587_v51 }
 0x247   :  { %v1416_v10 = vunpack.c.l.b16 %v1093_v24  ;;  %v1417_v31 = vunpack.c.h.b16 %v1093_v24 }
 0x248   :  { %v788_v35 = vpop.xlane.xlu1 %787  ;;  %v785_v59 = vpop.xlane.xlu0 %784 }
 0x249   :  { %v2116_v47 = vrot.slane %v1416_v10, %v3545_v22  ;;  %v2121_v20 = vrot.slane %v1417_v31, %v3553_v27  ;;  %v1126_v42 = vpack.c.bf16 %v788_v35, %v785_v59 }
 0x24b   :  { %v2117_v14 = vsel %vm1628_vm8, %v2116_v47, %v2112_v11  ;;  %v1482_v9 = vunpack.c.l.b16 %v1126_v42  ;;  %v1483_v24 = vunpack.c.h.b16 %v1126_v42 }
 0x24c   :  { %v4846_v60 = vsel %vm1635_vm9, %v2121_v20, %v2117_v14  ;;  %v974_v6 = vpop.xlane.xlu1 %973  ;;  %v971_v41 = vpop.xlane.xlu0 %970 }
 0x24d   :  { %v1157_v40 = vpack.c.bf16 %v974_v6, %v971_v41  ;;  %v2442_v31 = vrot.slane %v1482_v9, %v3571_v48  ;;  %v1561_v6 = vunpack.c.h.b16 %v1165_v17  ;;  %v2827_v41 = vrot.slane %v1560_v33, %v3545_v22 }
 0x24e   :  { %v2447_v55 = vrot.slane %v1483_v24, %v3581_v56 }
 0x24f   :  { %v1544_v35 = vunpack.c.l.b16 %v1157_v40  ;;  %v2443_v1 = vsel %vm1642_vm10, %v2442_v31, %v4828_v16  ;;  %v2832_v17 = vrot.slane %v1561_v6, %v3553_v27 }
 0x250   :  { %v644_v49 = vpop.xlane.xlu1 %643  ;;  %v641_v57 = vpop.xlane.xlu0 %640 }
 0x251   :  { %v1102_v20 = vpack.c.bf16 %v644_v49, %v641_v57  ;;  %v2748_v49 = vrot.slane %v1544_v35, %v3545_v22 }
 0x254   :  { %v842_v23 = vpop.xlane.xlu1 %841  ;;  %v839_v44 = vpop.xlane.xlu0 %838 }
 0x255   :  { %v1135_v11 = vpack.c.bf16 %v842_v23, %v839_v44 }
 0x257   :  { %v1500_v0 = vunpack.c.l.b16 %v1135_v11  ;;  %v1501_v18 = vunpack.c.h.b16 %v1135_v11 }
 0x258   :  { %v1028_v62 = vpop.xlane.xlu1 %1027  ;;  %v1025_v53 = vpop.xlane.xlu0 %1024 }
 0x259   :  { %v2531_v12 = vrot.slane %v1500_v0, %v3588_v3  ;;  %v2536_v52 = vrot.slane %v1501_v18, %v3591_v4  ;;  %v1434_v0 = vunpack.c.l.b16 %v1102_v20 }
 0x25b   :  { %v2532_v58 = vsel %vm1656_vm12, %v2531_v12, %v2527_v37 }
 0x25c   :  { %v4848_v29 = vpop.xlane.xlu1 %595  ;;  %v4850_v54 = vpop.xlane.xlu0 %592  ;;  %v2537_v14 = vsel %vm1663_vm13, %v2536_v52, %v2532_v58 }
 0x260   :  { %v794_v5 = vpop.xlane.xlu1 %793  ;;  %v791_v34 = vpop.xlane.xlu0 %790 }
 0x261   :  { %v1127_v51 = vpack.c.bf16 %v794_v5, %v791_v34  ;;  %v1545_v5 = vunpack.c.h.b16 %v1157_v40  ;;  %v1166_v34 = vpack.c.bf16 %v1028_v62, %v1025_v53  ;;  %v2828_v62 = vsel %vm1628_vm8, %v2827_v41, %v4818_v25 }
 0x262   :  { %v2448_v53 = vsel %vm1649_vm11, %v2447_v55, %v2443_v1  ;;  %v2205_v40 = vrot.slane %v1434_v0, %v3571_v48  ;;  %v1094_v25 = vpack.c.bf16 %v4848_v29, %v4850_v54 }
 0x263   :  { %v1484_v23 = vunpack.c.l.b16 %v1127_v51  ;;  %v1485_v42 = vunpack.c.h.b16 %v1127_v51  ;;  %v2753_v26 = vrot.slane %v1545_v5, %v3553_v27  ;;  %v1562_v16 = vunpack.c.l.b16 %v1166_v34 }
 0x264   :  { %v4852_v38 = vpop.xlane.xlu1 %979  ;;  %v4854_v61 = vpop.xlane.xlu0 %976  ;;  %v2833_v51 = vsel %vm1635_vm9, %v2832_v17, %v2828_v62  ;;  %v1418_v31 = vunpack.c.l.b16 %v1094_v25  ;;  %v2206_v35 = vsel %vm1642_vm10, %v2205_v40, %v4840_v2  ;;  %v1419_v5 = vunpack.c.h.b16 %v1094_v25 }
 0x265   :  { %v2452_v18 = vrot.slane %v1484_v23, %v3588_v3  ;;  %v2457_v37 = vrot.slane %v1485_v42, %v3591_v4 }
 0x267   :  { %v2453_v27 = vsel %vm1656_vm12, %v2452_v18, %v2448_v53  ;;  %v2131_v53 = vrot.slane %v1419_v5, %v3581_v56 }
 0x268   :  { %v650_v36 = vpop.xlane.xlu1 %649  ;;  %v647_v32 = vpop.xlane.xlu0 %646 }
 0x26c   :  { %v848_v8 = vpop.xlane.xlu1 %847  ;;  %v845_v50 = vpop.xlane.xlu0 %844 }
 0x26d   :  { %v1136_v45 = vpack.c.bf16 %v848_v8, %v845_v50  ;;  %v1435_v8 = vunpack.c.h.b16 %v1102_v20  ;;  %v1103_v50 = vpack.c.bf16 %v650_v36, %v647_v32 }
 0x26f   :  { %v1502_v13 = vunpack.c.l.b16 %v1136_v45  ;;  %v1503_v46 = vunpack.c.h.b16 %v1136_v45  ;;  %v1563_v45 = vunpack.c.h.b16 %v1166_v34  ;;  %v2210_v54 = vrot.slane %v1435_v8, %v3581_v56 }
 0x270   :  { %v1034_v10 = vpop.xlane.xlu1 %1033  ;;  %v1031_v39 = vpop.xlane.xlu0 %1030  ;;  %v1437_v6 = vunpack.c.h.b16 %v1103_v50 }
 0x271   :  { %v2541_v59 = vrot.slane %v1502_v13, %v3606_v19  ;;  %v2546_v47 = vrot.slane %v1503_v46, %v3613_v28  ;;  %v1167_v33 = vpack.c.bf16 %v1034_v10, %v1031_v39  ;;  %v1436_v46 = vunpack.c.l.b16 %v1103_v50 }
 0x272   :  { %v2458_v10 = vsel %vm1663_vm13, %v2457_v37, %v2453_v27  ;;  %v1158_v39 = vpack.c.bf16 %v4852_v38, %v4854_v61  ;;  %v2126_v61 = vrot.slane %v1418_v31, %v3571_v48 }
 0x273   :  { %v2542_v44 = vsel %vm1670_vm14, %v2541_v59, %v2537_v14  ;;  %v2842_v59 = vrot.slane %v1563_v45, %v3581_v56  ;;  %v2215_v34 = vrot.slane %v1436_v46, %v3588_v3  ;;  %v1565_v1 = vunpack.c.h.b16 %v1167_v33 }
 0x274   :  { %v602_v30 = vpop.xlane.xlu1 %601  ;;  %v599_v11 = vpop.xlane.xlu0 %598  ;;  %v2547_v7 = vsel %vm1677_vm15, %v2546_v47, %v2542_v44  ;;  %v1564_v47 = vunpack.c.l.b16 %v1167_v33 }
 0x275   :  { %v2868_v57 = vsel %vm2864_vm7, %v2547_v7, %v3934_v43  ;;  %v2749_v43 = vsel %vm1628_vm8, %v2748_v49, %v4834_v15  ;;  %v2837_v15 = vrot.slane %v1562_v16, %v3571_v48  ;;  %v1095_v41 = vpack.c.bf16 %v602_v30, %v599_v11 }
 0x276   :  { %v2876_v63 = vpack.c.b16 %v2868_v57, %v2868_v57  ;;  %v4893_v32 = vsel %vm1635_vm9, %v2753_v26, %v2749_v43  ;;  %v1546_v7 = vunpack.c.l.b16 %v1158_v39  ;;  %v2211_v57 = vsel %vm1649_vm11, %v2210_v54, %v2206_v35 }
 0x277   :  { %v2838_v14 = vsel %vm1642_vm10, %v2837_v15, %v2833_v51  ;;  %v2847_v30 = vrot.slane %v1564_v47, %v3588_v3  ;;  %v1420_v17 = vunpack.c.l.b16 %v1095_v41  ;;  %v2216_v26 = vsel %vm1656_vm12, %v2215_v34, %v2211_v57 }
 0x278   :  { %v800_v12 = vpop.xlane.xlu1 %799  ;;  %3001 = vmatprep.mubr.bf16.mxu1 %v2876_v63  ;;  %v797_v22 = vpop.xlane.xlu0 %796  ;;  %v2843_v42 = vsel %vm1649_vm11, %v2842_v59, %v2838_v14  ;;  %v2220_v63 = vrot.slane %v1437_v6, %v3591_v4  ;;  %v1547_v43 = vunpack.c.h.b16 %v1158_v39  ;;  %v2758_v8 = vrot.slane %v1546_v7, %v3571_v48 }
 0x279   :  { %v1128_v9 = vpack.c.bf16 %v800_v12, %v797_v22  ;;  %v2127_v22 = vsel %vm1642_vm10, %v2126_v61, %v4846_v60  ;;  %v2852_v50 = vrot.slane %v1565_v1, %v3591_v4  ;;  %v1421_v27 = vunpack.c.h.b16 %v1095_v41 }
 0x27a   :  { %v2221_v37 = vsel %vm1663_vm13, %v2220_v63, %v2216_v26  ;;  %v2136_v33 = vrot.slane %v1420_v17, %v3588_v3  ;;  %v2763_v46 = vrot.slane %v1547_v43, %v3581_v56  ;;  %v2759_v54 = vsel %vm1642_vm10, %v2758_v8, %v4893_v32 }
 0x27b   :  { %v1486_v52 = vunpack.c.l.b16 %v1128_v9  ;;  %v1487_v58 = vunpack.c.h.b16 %v1128_v9  ;;  %v2848_v9 = vsel %vm1656_vm12, %v2847_v30, %v2843_v42  ;;  %v2141_v35 = vrot.slane %v1421_v27, %v3591_v4 }
 0x27c   :  { %v986_v13 = vpop.xlane.xlu1 %985  ;;  %v983_v36 = vpop.xlane.xlu0 %982 }
 0x27d   :  { %v2462_v24 = vrot.slane %v1486_v52, %v3606_v19  ;;  %v2467_v29 = vrot.slane %v1487_v58, %v3613_v28  ;;  %v1159_v11 = vpack.c.bf16 %v986_v13, %v983_v36  ;;  %v2132_v36 = vsel %vm1649_vm11, %v2131_v53, %v2127_v22 }
 0x27e   :  { %v2137_v6 = vsel %vm1656_vm12, %v2136_v33, %v2132_v36 }
 0x27f   :  { %v2463_v20 = vsel %vm1670_vm14, %v2462_v24, %v2458_v10  ;;  %v1548_v40 = vunpack.c.l.b16 %v1159_v11  ;;  %v2853_v24 = vsel %vm1663_vm13, %v2852_v50, %v2848_v9 }
 0x280   :  { %v2468_v23 = vsel %vm1677_vm15, %v2467_v29, %v2463_v20  ;;  %v656_v44 = vpop.xlane.xlu1 %655  ;;  %v653_v55 = vpop.xlane.xlu0 %652  ;;  %v1549_v29 = vunpack.c.h.b16 %v1159_v11 }
 0x281   :  { %v1104_v38 = vpack.c.bf16 %v656_v44, %v653_v55  ;;  %v2867_v2 = vsel %vm2864_vm7, %v2468_v23, %v3831_v21  ;;  %v2768_v31 = vrot.slane %v1548_v40, %v3588_v3  ;;  %v2764_v3 = vsel %vm1649_vm11, %v2763_v46, %v2759_v54 }
 0x282   :  { %v2875_v49 = vpack.c.b16 %v2867_v2, %v2867_v2  ;;  %v2773_v44 = vrot.slane %v1549_v29, %v3591_v4  ;;  %v2142_v2 = vsel %vm1663_vm13, %v2141_v35, %v2137_v6 }
 0x283   :  { %v1438_v0 = vunpack.c.l.b16 %v1104_v38  ;;  %v1439_v18 = vunpack.c.h.b16 %v1104_v38  ;;  %v2769_v5 = vsel %vm1656_vm12, %v2768_v31, %v2764_v3 }
 0x284   :  { %v1040_v62 = vpop.xlane.xlu1 %1039  ;;  %3002 = vmatmul.mubr.bf16.vlgmr.msra.gmra.mrb[0].mxu1 %v2875_v49  ;;  %v1037_v21 = vpop.xlane.xlu0 %1036  ;;  %v2774_v57 = vsel %vm1663_vm13, %v2773_v44, %v2769_v5 }
 0x285   :  { %v2225_v16 = vrot.slane %v1438_v0, %v3606_v19  ;;  %v1168_v12 = vpack.c.bf16 %v1040_v62, %v1037_v21  ;;  %v2230_v52 = vrot.slane %v1439_v18, %v3613_v28 }
 0x287   :  { %v1566_v45 = vunpack.c.l.b16 %v1168_v12  ;;  %v1567_v25 = vunpack.c.h.b16 %v1168_v12  ;;  %v2226_v13 = vsel %vm1670_vm14, %v2225_v16, %v2221_v37 }
 0x288   :  { %v608_v58 = vpop.xlane.xlu1 %607  ;;  %v605_v51 = vpop.xlane.xlu0 %604  ;;  %v2231_v14 = vsel %vm1677_vm15, %v2230_v52, %v2226_v13 }
 0x289   :  { %v2857_v60 = vrot.slane %v1566_v45, %v3606_v19  ;;  %v2862_v48 = vrot.slane %v1567_v25, %v3613_v28  ;;  %v1096_v15 = vpack.c.bf16 %v608_v58, %v605_v51 }
 0x28b   :  { %v1422_v10 = vunpack.c.l.b16 %v1096_v15  ;;  %v2858_v39 = vsel %vm1670_vm14, %v2857_v60, %v2853_v24  ;;  %v1423_v59 = vunpack.c.h.b16 %v1096_v15 }
 0x28c   :  { %v992_v47 = vpop.xlane.xlu1 %991  ;;  %v989_v20 = vpop.xlane.xlu0 %988  ;;  %v2863_v56 = vsel %vm1677_vm15, %v2862_v48, %v2858_v39 }
 0x28d   :  { %v2146_v41 = vrot.slane %v1422_v10, %v3606_v19  ;;  %v1160_v23 = vpack.c.bf16 %v992_v47, %v989_v20  ;;  %v2872_v32 = vsel %vm2864_vm7, %v2863_v56, %v2231_v14  ;;  %v2151_v61 = vrot.slane %v1423_v59, %v3613_v28 }
 0x28e   :  { %v2880_v55 = vpack.c.b16 %v2872_v32, %v2872_v32 }
 0x28f   :  { %v1550_v34 = vunpack.c.l.b16 %v1160_v23  ;;  %v1551_v38 = vunpack.c.h.b16 %v1160_v23  ;;  %v2147_v7 = vsel %vm1670_vm14, %v2146_v41, %v2142_v2 }
 0x290   :  { %3081 = vmatprep.mubr.bf16.mxu0 %v2880_v55  ;;  %v2152_v30 = vsel %vm1677_vm15, %v2151_v61, %v2147_v7 }
 0x291   :  { %v2778_v1 = vrot.slane %v1550_v34, %v3606_v19  ;;  %v2783_v49 = vrot.slane %v1551_v38, %v3613_v28  ;;  %v3105_v19 = vld [vmem:[%s4972_s2] ss:$0 sm:$0xff] }
 0x293   :  { %v2779_v4 = vsel %vm1670_vm14, %v2778_v1, %v2774_v57 }
 0x294   :  { %v2784_v11 = vsel %vm1677_vm15, %v2783_v49, %v2779_v4 }
 0x295   :  { %v2871_v0 = vsel %vm2864_vm7, %v2784_v11, %v2152_v30 }
 0x296   :  { %v2879_v42 = vpack.c.b16 %v2871_v0, %v2871_v0 }
 0x298   :  { %3082 = vmatmul.mubr.bf16.vlgmr.msra.gmra.mrb[0].mxu0 %v2879_v42 }
 0x357   :  { %v3003_v63 = vpop.f32.mrb[0].mxu1 }
 0x358   :  { %v3005_v17 = vpop.f32.mrb[1].mxu1  ;;  %v3114_v28 = vadd.f32 %v3105_v19, %v3003_v63 }
 0x359   :  { %v3006_v18 = vpop.f32.mrb[2].mxu1 }
 0x35a   :  { %v3007_v62 = vpop.f32.mrb[3].mxu1 }
 0x36b   :  { %v3083_v21 = vpop.f32.mrb[0].mxu0 }
 0x36c   :  { %v3115_v53 = vadd.f32 %v3114_v28, %v3083_v21  ;;  %v3085_v26 = vpop.f32.mrb[1].mxu0 }
 0x36d   :  { %v3086_v16 = vpop.f32.mrb[2].mxu0 }
 0x36e   :  { %v3087_v12 = vpop.f32.mrb[3].mxu0  ;;  %3090 = vst.msk [vmem:[#allocation2] sm:$0x3] %vm3089_vm6, %v3115_v53 }
 0x36f   :  { %3136 = shalt.err (!%p3133_p4)
}
 0x370   :  { %s3137_s4 = scalar_lea.hbm %s4973_s3, 32 }
 0x371   :  { %p3138_p5 = scmp.ne.s32.totalorder %s4973_s3, %s3137_s4  ;;  %p3141_p6 = scmp.lt.u32.totalorder %s3137_s4, %s4973_s3 }
 0x373   :  { %p3143_p7 = pnand %p3141_p6, %p3138_p5 }
 0x375   :  { %3146 = shalt.err (!%p3143_p7)
}
 0x376   :  { %3100 = dma.vmem_to_hbm [thread:$0]  %s3098_s28, 32, %s4973_s3, [#allocation3]  }
 0x377   :  { %3147 = dma.done.wait [#allocation3], 32  }
 0x378   :  { %3148 = vsyncadd [#allocation3], 4294967264 }
 0x379   :  { %3104 = vsyncpa [#allocation3], 1 }

</bundles_post_ra>
